<compile_context>
chip_gen: v7x
topology: tpu7x:2x2x1
jax: 0.10.0
libtpu: 0.0.40
codegen_flags: <defaults>
</compile_context>

<pallas_src>
import jax
import jax.numpy as jnp
from jax.experimental import pallas as pl
from jax.experimental.pallas import tpu as pltpu

# Slab row layout (bf16, every block lane-padded to 128 cols):
#   rows   0:128  W_conv  im2col-folded conv weight, [127,127]=1   (valid  (9, 64))
#   rows 128:256  W_fc    fc.weight.T, row127=fc bias, [127,127]=1 (valid (64, 32))
#   rows 256:384  W_h1    [a1.T | v1.T], row127=biases, [127,127]=1(valid (32, 24))
#   rows 384:512  W_h2    block-diag [a2.T ; v2.T], row127=biases  (valid (24, 10))
R_CONV, R_FC, R_H1, R_H2 = 0, 128, 256, 384
SLAB_ROWS = 512
LANES = 128
TILE_B = 256            # board tile per grid step (multiple of 8; >=256 for v6e/v7x)


def policy_kernel(x_ref, w_ref, out_ref):
    x = x_ref[...]                                  # (TILE_B,128) f32; lanes 0:9 board, 127 = 1
    xb = x.astype(jnp.bfloat16)

    # conv(1->16, k=2, no bias) as one bf16 matmul on the im2col-folded weight + ReLU.
    # Lanes 0:64 hold the channel-major flatten (ch*4 + pos) = PyTorch .view(-1,64);
    # lane 127 carries the homogeneous 1 forward.
    h = jnp.maximum(jnp.dot(xb, w_ref[R_CONV:R_CONV + 128, :],
                            preferred_element_type=jnp.float32), 0.0)

    # fc + bias (via row 127) + ReLU: lanes 0:32 valid.
    y = jnp.maximum(jnp.dot(h.astype(jnp.bfloat16), w_ref[R_FC:R_FC + 128, :],
                            preferred_element_type=jnp.float32), 0.0)

    # fused head layer 1 (fc_action1 || fc_value1) + biases + ReLU: lanes 0:24 valid.
    h1 = jnp.maximum(jnp.dot(y.astype(jnp.bfloat16), w_ref[R_H1:R_H1 + 128, :],
                             preferred_element_type=jnp.float32), 0.0)

    # fused head layer 2 (block-diag fc_action2 / fc_value2) + biases:
    #   lanes 0:9 = action logits, lane 9 = pre-tanh value, rest = 0.
    h2 = jnp.dot(h1.astype(jnp.bfloat16), w_ref[R_H2:R_H2 + 128, :],
                 preferred_element_type=jnp.float32)

    # Per-board masked softmax over the 9 cells (mask computed on the f32 board).
    lane = jax.lax.broadcasted_iota(jnp.int32, h2.shape, 1)
    action_lane = lane < 9
    avail = jnp.where(action_lane & (jnp.abs(x) != 1.0), 1.0, 0.0)
    maxa = jnp.max(jnp.where(action_lane, h2, -1e30), axis=1, keepdims=True)
    e = avail * jnp.exp(h2 - maxa)
    denom = jnp.maximum(jnp.sum(e, axis=1, keepdims=True), 1e-30)  # guard all-occupied boards
    prob = e * pl.reciprocal(denom, approx=True)

    # One lane-dense f32 store: lanes 0:9 = prob, lane 9 = tanh(value).
    out_ref[...] = jnp.where(lane == 9, jnp.tanh(h2), prob)


def init_params(key):
    ks = jax.random.split(key, 11)

    def rnd(k, shape, scale=0.1):
        return scale * jax.random.normal(k, shape, dtype=jnp.float32)

    return {
        "conv_w": rnd(ks[0], (16, 1, 2, 2)),   # Conv2d(1, 16, k=2, bias=False)
        "fc_w": rnd(ks[1], (32, 64)),  "fc_b": rnd(ks[2], (32,)),
        "a1_w": rnd(ks[3], (16, 32)),  "a1_b": rnd(ks[4], (16,)),
        "a2_w": rnd(ks[5], (9, 16)),   "a2_b": rnd(ks[6], (9,)),
        "v1_w": rnd(ks[7], (32, 8)).T if False else rnd(ks[7], (8, 32)), "v1_b": rnd(ks[8], (8,)),
        "v2_w": rnd(ks[9], (1, 8)),    "v2_b": rnd(ks[10], (1,)),
    }


def pack_params(p):
    # Fold im2col into the conv weight:
    #   h[ch*4 + i*2 + j] = sum_{kh,kw} board[(i+kh)*3 + (j+kw)] * w[ch,0,kh,kw]
    wk = p["conv_w"][:, 0]                              # (16, 2, 2)
    w_im = jnp.zeros((9, 16, 4), jnp.float32)
    for i in range(2):
        for j in range(2):
            pos = i * 2 + j
            for kh in range(2):
                for kw in range(2):
                    row = (i + kh) * 3 + (j + kw)
                    w_im = w_im.at[row, :, pos].set(wk[:, kh, kw])
    w_conv = w_im.reshape(9, 64)                        # col = ch*4 + pos

    def block(w, bias=None, carry_one=False):
        r, c = w.shape
        blk = jnp.zeros((128, 128), jnp.float32).at[:r, :c].set(w)
        if bias is not None:
            blk = blk.at[127, :bias.shape[0]].set(bias)     # bias via homogeneous lane
        if carry_one:
            blk = blk.at[127, 127].set(1.0)                 # propagate the 1 to next layer
        return blk

    # fused head layer 1: [a1.T | v1.T] -> (32, 24)
    w_h1 = jnp.concatenate([p["a1_w"].T, p["v1_w"].T], axis=1)
    # fused head layer 2: block-diagonal (24, 10)
    w_h2 = jnp.zeros((24, 10), jnp.float32)
    w_h2 = w_h2.at[0:16, 0:9].set(p["a2_w"].T)
    w_h2 = w_h2.at[16:24, 9:10].set(p["v2_w"].T)

    slab = jnp.concatenate([
        block(w_conv, bias=None, carry_one=True),
        block(p["fc_w"].T, bias=p["fc_b"], carry_one=True),
        block(w_h1, bias=jnp.concatenate([p["a1_b"], p["v1_b"]]), carry_one=True),
        block(w_h2, bias=jnp.concatenate([p["a2_b"], p["v2_b"]]), carry_one=False),
    ], axis=0)
    assert slab.shape == (SLAB_ROWS, LANES)
    return slab.astype(jnp.bfloat16)                    # 128 KB, bf16-native for the MXU


@jax.jit
def policy_forward_batch(xs, slab):
    # xs: (B, 1, 3, 3) NCHW boards. Returns per-board (B,3,3) probs, (B,1) values.
    B = xs.shape[0]
    b_pad = ((B + TILE_B - 1) // TILE_B) * TILE_B
    x128 = jnp.zeros((b_pad, LANES), jnp.float32)
    x128 = x128.at[:B, :9].set(xs.reshape(B, 9))
    x128 = x128.at[:, 127].set(1.0)                     # homogeneous lane for bias folding

    out = pl.pallas_call(
        policy_kernel,
        out_shape=jax.ShapeDtypeStruct((b_pad, LANES), jnp.float32),
        grid=(b_pad // TILE_B,),
        in_specs=[
            pl.BlockSpec((TILE_B, LANES), lambda i: (i, 0)),        # board tiles stream
            pl.BlockSpec((SLAB_ROWS, LANES), lambda i: (0, 0)),     # slab resident in VMEM
        ],
        out_specs=pl.BlockSpec((TILE_B, LANES), lambda i: (i, 0)),
        compiler_params=pltpu.CompilerParams(
            dimension_semantics=("parallel",)),                     # split tiles across TCs (v7x)
    )(x128, slab)

    prob = out[:B, :9].reshape(B, 3, 3)
    value = out[:B, 9:10]
    return prob, value


def policy_forward(x, slab):
    # Single-board path matching the PyTorch module exactly: x (1,1,3,3) -> ((3,3), (1,1)).
    prob, value = policy_forward_batch(x.reshape(1, 1, 3, 3), slab)
    return prob[0], value


def policy_ref(x, p):
    # Pure-JAX reference mirroring the PyTorch forward exactly (f32 weights).
    y = jax.lax.conv_general_dilated(
        x, p["conv_w"], window_strides=(1, 1), padding="VALID",
        dimension_numbers=("NCHW", "OIHW", "NCHW"))     # (1,16,2,2)
    y = jnp.maximum(y, 0.0).reshape(-1, 64)
    y = jnp.maximum(y @ p["fc_w"].T + p["fc_b"], 0.0)
    a = jnp.maximum(y @ p["a1_w"].T + p["a1_b"], 0.0)
    a = a @ p["a2_w"].T + p["a2_b"]
    avail = (jnp.abs(x.squeeze()) != 1).astype(jnp.float32).reshape(-1, 9)
    maxa = jnp.max(a)
    e = avail * jnp.exp(a - maxa)
    prob = e / jnp.sum(e)
    v = jnp.maximum(y @ p["v1_w"].T + p["v1_b"], 0.0)
    v = jnp.tanh(v @ p["v2_w"].T + p["v2_b"])
    return prob.reshape(3, 3), v


def policy_ref_batch(xs, p):
    prob, v = jax.vmap(lambda b: policy_ref(b[None], p))(xs)   # xs: (B,1,3,3)
    return prob, v.reshape(xs.shape[0], 1)


if __name__ == "__main__":
    key = jax.random.PRNGKey(0)
    k_in, k_par, k_b = jax.random.split(key, 3)

    params = init_params(k_par)
    slab = pack_params(params)

    # --- single board, exactly the nn.Module contract -------------------------------
    board = jax.random.randint(k_in, (3, 3), -1, 2).astype(jnp.float32)
    board = board.at[1, 1].set(0.0)                     # at least one empty cell
    x = board.reshape(1, 1, 3, 3)                       # NCHW

    prob, value = policy_forward(x, slab)
    jax.block_until_ready((prob, value))

    rprob, rvalue = policy_ref(x, params)
    assert prob.shape == (3, 3) and value.shape == (1, 1)
    # bf16 weights/activations -> tolerance relaxed from 1e-5 to 2e-2 (per review).
    assert jnp.allclose(prob, rprob, atol=2e-2, rtol=2e-2)
    assert jnp.allclose(value, rvalue, atol=2e-2, rtol=2e-2)

    # --- batched MCTS-style leaf evaluation (B not a TILE_B multiple on purpose) ----
    B = 300
    boards = jax.random.randint(k_b, (B, 3, 3), -1, 2).astype(jnp.float32)
    boards = boards.at[:, 1, 1].set(0.0)                # guarantee >=1 empty cell / board
    xs = boards.reshape(B, 1, 3, 3)

    bprob, bvalue = policy_forward_batch(xs, slab)
    jax.block_until_ready((bprob, bvalue))

    rbprob, rbvalue = policy_ref_batch(xs, params)
    assert bprob.shape == (B, 3, 3) and bvalue.shape == (B, 1)
    assert jnp.allclose(bprob, rbprob, atol=2e-2, rtol=2e-2)
    assert jnp.allclose(bvalue, rbvalue, atol=2e-2, rtol=2e-2)

    print("KERNEL_OK")
</pallas_src>

<mosaic_0001>
module attributes {stable_mosaic.version = 11 : i64} {
  func.func @policy_kernel(%arg0: i32, %arg1: memref<256x128xf32, #tpu.memory_space<vmem>>, %arg2: memref<512x128xbf16, #tpu.memory_space<vmem>>, %arg3: memref<256x128xf32, #tpu.memory_space<vmem>>) attributes {dimension_semantics = [#tpu.dimension_semantics<parallel>], iteration_bounds = array<i64: 1>, scalar_prefetch = 0 : i64, scratch_operands = 0 : i64, tpu.core_type = #tpu.core_type<tc>, window_params = [{transform_indices = @transform_0, window_bounds = array<i64: 256, 128>}, {pipeline_mode = #tpu.pipeline_mode<synchronous>, transform_indices = @transform_1, window_bounds = array<i64: 512, 128>}, {transform_indices = @transform_2, window_bounds = array<i64: 256, 128>}]} {
    %c0 = arith.constant 0 : index
    %c0_0 = arith.constant 0 : index
    %0 = vector.load %arg1[%c0, %c0_0] : memref<256x128xf32, #tpu.memory_space<vmem>>, vector<256x128xf32>
    %1 = arith.truncf %0 : vector<256x128xf32> to vector<256x128xbf16>
    %c0_1 = arith.constant 0 : index
    %c0_2 = arith.constant 0 : index
    %2 = vector.load %arg2[%c0_1, %c0_2] : memref<512x128xbf16, #tpu.memory_space<vmem>>, vector<128x128xbf16>
    %cst = arith.constant dense<0.000000e+00> : vector<256x128xf32>
    %3 = tpu.matmul %1, %2, %cst {dimension_numbers = #tpu.dot_dimension_numbers<[1], [0], [0], [1], [0, 0, 1, 1], [], []>} : vector<256x128xbf16>, vector<128x128xbf16>, vector<256x128xf32> -> vector<256x128xf32>
    %cst_3 = arith.constant 0.000000e+00 : f32
    %4 = vector.broadcast %cst_3 : f32 to vector<256x128xf32>
    %5 = arith.maximumf %3, %4 : vector<256x128xf32>
    %6 = arith.truncf %5 : vector<256x128xf32> to vector<256x128xbf16>
    %c128 = arith.constant 128 : index
    %c0_4 = arith.constant 0 : index
    %7 = vector.load %arg2[%c128, %c0_4] : memref<512x128xbf16, #tpu.memory_space<vmem>>, vector<128x128xbf16>
    %cst_5 = arith.constant dense<0.000000e+00> : vector<256x128xf32>
    %8 = tpu.matmul %6, %7, %cst_5 {dimension_numbers = #tpu.dot_dimension_numbers<[1], [0], [0], [1], [0, 0, 1, 1], [], []>} : vector<256x128xbf16>, vector<128x128xbf16>, vector<256x128xf32> -> vector<256x128xf32>
    %cst_6 = arith.constant 0.000000e+00 : f32
    %9 = vector.broadcast %cst_6 : f32 to vector<256x128xf32>
    %10 = arith.maximumf %8, %9 : vector<256x128xf32>
    %11 = arith.truncf %10 : vector<256x128xf32> to vector<256x128xbf16>
    %c256 = arith.constant 256 : index
    %c0_7 = arith.constant 0 : index
    %12 = vector.load %arg2[%c256, %c0_7] : memref<512x128xbf16, #tpu.memory_space<vmem>>, vector<128x128xbf16>
    %cst_8 = arith.constant dense<0.000000e+00> : vector<256x128xf32>
    %13 = tpu.matmul %11, %12, %cst_8 {dimension_numbers = #tpu.dot_dimension_numbers<[1], [0], [0], [1], [0, 0, 1, 1], [], []>} : vector<256x128xbf16>, vector<128x128xbf16>, vector<256x128xf32> -> vector<256x128xf32>
    %cst_9 = arith.constant 0.000000e+00 : f32
    %14 = vector.broadcast %cst_9 : f32 to vector<256x128xf32>
    %15 = arith.maximumf %13, %14 : vector<256x128xf32>
    %16 = arith.truncf %15 : vector<256x128xf32> to vector<256x128xbf16>
    %c384 = arith.constant 384 : index
    %c0_10 = arith.constant 0 : index
    %17 = vector.load %arg2[%c384, %c0_10] : memref<512x128xbf16, #tpu.memory_space<vmem>>, vector<128x128xbf16>
    %cst_11 = arith.constant dense<0.000000e+00> : vector<256x128xf32>
    %18 = tpu.matmul %16, %17, %cst_11 {dimension_numbers = #tpu.dot_dimension_numbers<[1], [0], [0], [1], [0, 0, 1, 1], [], []>} : vector<256x128xbf16>, vector<128x128xbf16>, vector<256x128xf32> -> vector<256x128xf32>
    %19 = tpu.iota {dimensions = array<i32: 1>} : vector<256x128xi32>
    %c9_i32 = arith.constant 9 : i32
    %20 = vector.broadcast %c9_i32 : i32 to vector<256x128xi32>
    %21 = arith.cmpi slt, %19, %20 : vector<256x128xi32>
    %22 = math.absf %0 : vector<256x128xf32>
    %cst_12 = arith.constant 1.000000e+00 : f32
    %23 = vector.broadcast %cst_12 : f32 to vector<256x128xf32>
    %24 = arith.cmpf one, %22, %23 : vector<256x128xf32>
    %25 = arith.andi %21, %24 : vector<256x128xi1>
    %cst_13 = arith.constant 1.000000e+00 : f32
    %cst_14 = arith.constant 0.000000e+00 : f32
    %26 = vector.broadcast %cst_13 : f32 to vector<256x128xf32>
    %27 = vector.broadcast %cst_14 : f32 to vector<256x128xf32>
    %28 = arith.select %25, %26, %27 : vector<256x128xi1>, vector<256x128xf32>
    %cst_15 = arith.constant -1.000000e+30 : f32
    %29 = vector.broadcast %cst_15 : f32 to vector<256x128xf32>
    %30 = arith.select %21, %18, %29 : vector<256x128xi1>, vector<256x128xf32>
    %cst_16 = arith.constant dense<0xFF800000> : vector<256xf32>
    %31 = vector.multi_reduction <maximumf>, %30, %cst_16 [1] : vector<256x128xf32> to vector<256xf32>
    %32 = vector.shape_cast %31 : vector<256xf32> to vector<256x1xf32>
    %33 = vector.broadcast %32 : vector<256x1xf32> to vector<256x128xf32>
    %34 = arith.subf %18, %33 : vector<256x128xf32>
    %35 = math.exp %34 : vector<256x128xf32>
    %36 = arith.mulf %28, %35 : vector<256x128xf32>
    %cst_17 = arith.constant dense<0.000000e+00> : vector<256xf32>
    %37 = vector.multi_reduction <add>, %36, %cst_17 [1] : vector<256x128xf32> to vector<256xf32>
    %38 = vector.shape_cast %37 : vector<256xf32> to vector<256x1xf32>
    %cst_18 = arith.constant 1.000000e-30 : f32
    %39 = vector.broadcast %cst_18 : f32 to vector<256x1xf32>
    %40 = arith.maximumf %38, %39 : vector<256x1xf32>
    %41 = tpu.reciprocal %40 {approx = true} : vector<256x1xf32> -> vector<256x1xf32>
    %42 = vector.broadcast %41 : vector<256x1xf32> to vector<256x128xf32>
    %43 = arith.mulf %36, %42 : vector<256x128xf32>
    %c9_i32_19 = arith.constant 9 : i32
    %44 = vector.broadcast %c9_i32_19 : i32 to vector<256x128xi32>
    %45 = arith.cmpi eq, %19, %44 : vector<256x128xi32>
    %46 = math.tanh %18 : vector<256x128xf32>
    %47 = arith.select %45, %46, %43 : vector<256x128xi1>, vector<256x128xf32>
    %c0_20 = arith.constant 0 : index
    %c0_21 = arith.constant 0 : index
    %48 = vector.load %arg3[%c0_20, %c0_21] : memref<256x128xf32, #tpu.memory_space<vmem>>, vector<256x128xf32>
    tpu.vector_store %arg3[%c0_20, %c0_21], %47 {strides = array<i32>} : memref<256x128xf32, #tpu.memory_space<vmem>>, vector<256x128xf32>,
    return
  }
  func.func @transform_0(%arg0: i32) -> (i32, i32) {
    %c0_i32 = arith.constant 0 : i32
    %c0_i32_0 = arith.constant 0 : i32
    return %arg0, %c0_i32 : i32, i32
  }
  func.func @transform_1(%arg0: i32) -> (i32, i32) {
    %c0_i32 = arith.constant 0 : i32
    %c0_i32_0 = arith.constant 0 : i32
    %c0_i32_1 = arith.constant 0 : i32
    return %c0_i32, %c0_i32_0 : i32, i32
  }
  func.func @transform_2(%arg0: i32) -> (i32, i32) {
    %c0_i32 = arith.constant 0 : i32
    %c0_i32_0 = arith.constant 0 : i32
    return %arg0, %c0_i32 : i32, i32
  }
}

</mosaic_0001>

<bundles_post_ra>
// kernel: policy_forward_batch.1
= control target key start
LH: loop header
LB: loop body
LE: loop exit
PB: predicated region body
PF: predicated region fallthrough
CT: control target
= control target key end

     0   :  { %s3519_s1 = inlined_call_operand.vmem [shape: bf16[512,128], index: 1, kind: input, shape index: {}]   ;;  %s3520_s0 = inlined_call_operand.vmem [shape: f32[256,128], index: 0, kind: input, shape index: {}]   ;;  %s3521_s2 = inlined_call_operand.vmem [shape: f32[256,128], index: 2, kind: output, shape index: {}]  }
   0x1   :  { %v2041_v0 = vld [vmem:[%s3519_s1] sm:$0xff]   ;;  %v2042_v1 = vld [vmem:[%s3519_s1 + $0x8] sm:$0xff]   ;;  %v2043_v2 = vld [vmem:[%s3519_s1 + $0x10] sm:$0xff]  }
   0x2   :  { %1848 = vmatprep.subr.bf16.mxu0 %v2041_v0  ;;  %v2044_v3 = vld [vmem:[%s3519_s1 + $0x18] sm:$0xff]   ;;  %v12_v4 = vld [vmem:[%s3520_s0] sm:$0xff]  ;;  %v13_v5 = vld [vmem:[%s3520_s0 + $0x8] sm:$0xff] }
   0x3   :  { %1849 = vmatpush3.bf16.msra.mxu0 %v2041_v0  ;;  %v44_v6 = vpack.c.bf16 %v13_v5, %v12_v4  ;;  %v2045_v7 = vld [vmem:[%s3519_s1 + $0x20] sm:$0xff]   ;;  %v2046_v8 = vld [vmem:[%s3519_s1 + $0x28] sm:$0xff]   ;;  %v2047_v9 = vld [vmem:[%s3519_s1 + $0x30] sm:$0xff]  }
   0x4   :  { %1850 = vmatprep.subr.bf16.mxu0 %v2042_v1  ;;  %v2049_v10 = vld [vmem:[%s3519_s1 + $0x40] sm:$0xff]   ;;  %v2050_v11 = vld [vmem:[%s3519_s1 + $0x48] sm:$0xff]   ;;  %v2051_v12 = vld [vmem:[%s3519_s1 + $0x50] sm:$0xff]  }
   0x5   :  { %1864 = vmatprep.mubr.bf16.mxu0 %v44_v6  ;;  %1896 = vmatprep.subr.bf16.mxu1 %v2049_v10  ;;  %v2048_v13 = vld [vmem:[%s3519_s1 + $0x38] sm:$0xff]   ;;  %v14_v14 = vld [vmem:[%s3520_s0 + $0x10] sm:$0xff]  ;;  %v16_v17 = vld [vmem:[%s3520_s0 + $0x20] sm:$0xff] }
   0x6   :  { %1897 = vmatpush3.bf16.msra.mxu1 %v2049_v10  ;;  %v15_v15 = vld [vmem:[%s3520_s0 + $0x18] sm:$0xff]  ;;  %v17_v18 = vld [vmem:[%s3520_s0 + $0x28] sm:$0xff]  ;;  %v2053_v19 = vld [vmem:[%s3519_s1 + $0x60] sm:$0xff]  }
   0x7   :  { %1851 = vmatpush3.bf16.msra.mxu0 %v2042_v1  ;;  %1898 = vmatprep.subr.bf16.mxu1 %v2050_v11  ;;  %v2052_v16 = vld [vmem:[%s3519_s1 + $0x58] sm:$0xff]   ;;  %v45_v20 = vpack.c.bf16 %v15_v15, %v14_v14  ;;  %v46_v21 = vpack.c.bf16 %v17_v18, %v16_v17  ;;  %v18_v22 = vld [vmem:[%s3520_s0 + $0x30] sm:$0xff]  ;;  %v2054_v24 = vld [vmem:[%s3519_s1 + $0x68] sm:$0xff]  }
   0x8   :  { %1852 = vmatprep.subr.bf16.mxu0 %v2043_v2  ;;  %v19_v23 = vld [vmem:[%s3520_s0 + $0x38] sm:$0xff]  ;;  %v20_v25 = vld [vmem:[%s3520_s0 + $0x40] sm:$0xff]  ;;  %v21_v26 = vld [vmem:[%s3520_s0 + $0x48] sm:$0xff] }
   0x9   :  { %v47_v27 = vpack.c.bf16 %v19_v23, %v18_v22  ;;  %v48_v28 = vpack.c.bf16 %v21_v26, %v20_v25  ;;  %v22_v29 = vld [vmem:[%s3520_s0 + $0x50] sm:$0xff]  ;;  %v23_v30 = vld [vmem:[%s3520_s0 + $0x58] sm:$0xff]  ;;  %v24_v31 = vld [vmem:[%s3520_s0 + $0x60] sm:$0xff] }
   0xa   :  { %1899 = vmatpush3.bf16.msra.mxu1 %v2050_v11  ;;  %v25_v32 = vld [vmem:[%s3520_s0 + $0x68] sm:$0xff]  ;;  %v49_v33 = vpack.c.bf16 %v23_v30, %v22_v29  ;;  %v26_v35 = vld [vmem:[%s3520_s0 + $0x70] sm:$0xff]  ;;  %v27_v36 = vld [vmem:[%s3520_s0 + $0x78] sm:$0xff] }
   0xb   :  { %1853 = vmatpush3.bf16.msra.mxu0 %v2043_v2  ;;  %1900 = vmatprep.subr.bf16.mxu1 %v2051_v12  ;;  %v50_v34 = vpack.c.bf16 %v25_v32, %v24_v31  ;;  %v28_v37 = vld [vmem:[%s3520_s0 + $0x80] sm:$0xff]  ;;  %v29_v38 = vld [vmem:[%s3520_s0 + $0x88] sm:$0xff]  ;;  %v51_v39 = vpack.c.bf16 %v27_v36, %v26_v35  ;;  %v30_v41 = vld [vmem:[%s3520_s0 + $0x90] sm:$0xff] }
   0xc   :  { %1854 = vmatprep.subr.bf16.mxu0 %v2044_v3  ;;  %v52_v40 = vpack.c.bf16 %v29_v38, %v28_v37  ;;  %v31_v42 = vld [vmem:[%s3520_s0 + $0x98] sm:$0xff]  ;;  %v32_v43 = vld [vmem:[%s3520_s0 + $0xa0] sm:$0xff]  ;;  %v33_v44 = vld [vmem:[%s3520_s0 + $0xa8] sm:$0xff] }
   0xd   :  { %v53_v45 = vpack.c.bf16 %v31_v42, %v30_v41  ;;  %v54_v46 = vpack.c.bf16 %v33_v44, %v32_v43  ;;  %v34_v47 = vld [vmem:[%s3520_s0 + $0xb0] sm:$0xff]  ;;  %v35_v48 = vld [vmem:[%s3520_s0 + $0xb8] sm:$0xff]  ;;  %v36_v49 = vld [vmem:[%s3520_s0 + $0xc0] sm:$0xff] }
   0xe   :  { %1901 = vmatpush3.bf16.msra.mxu1 %v2051_v12  ;;  %v37_v50 = vld [vmem:[%s3520_s0 + $0xc8] sm:$0xff]  ;;  %v55_v51 = vpack.c.bf16 %v35_v48, %v34_v47  ;;  %v38_v53 = vld [vmem:[%s3520_s0 + $0xd0] sm:$0xff]  ;;  %v39_v54 = vld [vmem:[%s3520_s0 + $0xd8] sm:$0xff] }
   0xf   :  { %1855 = vmatpush3.bf16.msra.mxu0 %v2044_v3  ;;  %1902 = vmatprep.subr.bf16.mxu1 %v2052_v16  ;;  %v56_v52 = vpack.c.bf16 %v37_v50, %v36_v49  ;;  %v40_v55 = vld [vmem:[%s3520_s0 + $0xe0] sm:$0xff]  ;;  %v41_v56 = vld [vmem:[%s3520_s0 + $0xe8] sm:$0xff]  ;;  %v57_v57 = vpack.c.bf16 %v39_v54, %v38_v53  ;;  %v42_v59 = vld [vmem:[%s3520_s0 + $0xf0] sm:$0xff] }
  0x10   :  { %1856 = vmatprep.subr.bf16.mxu0 %v2045_v7  ;;  %v58_v58 = vpack.c.bf16 %v41_v56, %v40_v55  ;;  %v43_v60 = vld [vmem:[%s3520_s0 + $0xf8] sm:$0xff]  ;;  %v2055_v62 = vld [vmem:[%s3519_s1 + $0x70] sm:$0xff]   ;;  %v2057_v0 = vld [vmem:[%s3519_s1 + $0x80] sm:$0xff]  }
  0x11   :  { %v59_v61 = vpack.c.bf16 %v43_v60, %v42_v59  ;;  %v2056_v63 = vld [vmem:[%s3519_s1 + $0x78] sm:$0xff]   ;;  %v2058_v1 = vld [vmem:[%s3519_s1 + $0x88] sm:$0xff]   ;;  %v2059_v2 = vld [vmem:[%s3519_s1 + $0x90] sm:$0xff]  }
  0x12   :  { %1903 = vmatpush3.bf16.msra.mxu1 %v2052_v16  ;;  %v2060_v3 = vld [vmem:[%s3519_s1 + $0x98] sm:$0xff]   ;;  %v2061_v4 = vld [vmem:[%s3519_s1 + $0xa0] sm:$0xff]   ;;  %v2062_v5 = vld [vmem:[%s3519_s1 + $0xa8] sm:$0xff]  }
  0x13   :  { %1857 = vmatpush3.bf16.msra.mxu0 %v2045_v7  ;;  %1904 = vmatprep.subr.bf16.mxu1 %v2053_v19  ;;  %v2063_v6 = vld [vmem:[%s3519_s1 + $0xb0] sm:$0xff]  }
  0x14   :  { %1858 = vmatprep.subr.bf16.mxu0 %v2046_v8 }
  0x16   :  { %1905 = vmatpush3.bf16.msra.mxu1 %v2053_v19 }
  0x17   :  { %1859 = vmatpush3.bf16.msra.mxu0 %v2046_v8  ;;  %1906 = vmatprep.subr.bf16.mxu1 %v2054_v24 }
  0x18   :  { %1860 = vmatprep.subr.bf16.mxu0 %v2047_v9 }
  0x1a   :  { %1907 = vmatpush3.bf16.msra.mxu1 %v2054_v24 }
  0x1b   :  { %1861 = vmatpush3.bf16.msra.mxu0 %v2047_v9  ;;  %1908 = vmatprep.subr.bf16.mxu1 %v2055_v62 }
  0x1c   :  { %1862 = vmatprep.subr.bf16.mxu0 %v2048_v13 }
  0x1e   :  { %1909 = vmatpush3.bf16.msra.mxu1 %v2055_v62 }
  0x1f   :  { %1863 = vmatpush3.bf16.msra.mxu0 %v2048_v13  ;;  %1910 = vmatprep.subr.bf16.mxu1 %v2056_v63 }
  0x20   :  { %1944 = vmatprep.subr.bf16.mxu0 %v2057_v0 }
  0x22   :  { %1865 = vmatmul.mubr.bf16.vlgmr.msra.gmra.mrb[0].mxu0 %v45_v20  ;;  %1911 = vmatpush3.bf16.msra.mxu1 %v2056_v63 }
  0x23   :  { %1868 = vmatprep.mubr.bf16.mxu0 %v46_v21  ;;  %1945 = vmatpush3.bf16.msra.mxu0 %v2057_v0 }
  0x24   :  { %1946 = vmatprep.subr.bf16.mxu0 %v2058_v1 }
  0x27   :  { %1947 = vmatpush3.bf16.msra.mxu0 %v2058_v1 }
  0x28   :  { %1948 = vmatprep.subr.bf16.mxu0 %v2059_v2 }
  0x2a   :  { %1869 = vmatmul.mubr.bf16.gmra.mrb[4].mxu0 %v47_v27 }
  0x2b   :  { %1872 = vmatprep.mubr.bf16.mxu0 %v48_v28  ;;  %1949 = vmatpush3.bf16.msra.mxu0 %v2059_v2 }
  0x2c   :  { %1950 = vmatprep.subr.bf16.mxu0 %v2060_v3 }
  0x2f   :  { %1951 = vmatpush3.bf16.msra.mxu0 %v2060_v3 }
  0x30   :  { %1952 = vmatprep.subr.bf16.mxu0 %v2061_v4 }
  0x32   :  { %1873 = vmatmul.mubr.bf16.gmra.mrb[8].mxu0 %v49_v33 }
  0x33   :  { %1876 = vmatprep.mubr.bf16.mxu0 %v50_v34  ;;  %1953 = vmatpush3.bf16.msra.mxu0 %v2061_v4 }
  0x34   :  { %1954 = vmatprep.subr.bf16.mxu0 %v2062_v5 }
  0x37   :  { %1955 = vmatpush3.bf16.msra.mxu0 %v2062_v5 }
  0x38   :  { %1956 = vmatprep.subr.bf16.mxu0 %v2063_v6 }
  0x3a   :  { %1877 = vmatmul.mubr.bf16.gmra.mrb[12].mxu0 %v51_v39 }
  0x3b   :  { %1880 = vmatprep.mubr.bf16.mxu0 %v52_v40  ;;  %1957 = vmatpush3.bf16.msra.mxu0 %v2063_v6 }
  0x42   :  { %1881 = vmatmul.mubr.bf16.gmra.mrb[16].mxu0 %v53_v45 }
  0x43   :  { %1884 = vmatprep.mubr.bf16.mxu0 %v54_v46 }
  0x4a   :  { %1885 = vmatmul.mubr.bf16.gmra.mrb[20].mxu0 %v55_v51 }
  0x4b   :  { %1888 = vmatprep.mubr.bf16.mxu0 %v56_v52 }
  0x52   :  { %1889 = vmatmul.mubr.bf16.gmra.mrb[24].mxu0 %v57_v57 }
  0x53   :  { %1892 = vmatprep.mubr.bf16.mxu0 %v58_v58 }
  0x5a   :  { %1893 = vmatmul.mubr.bf16.gmra.mrb[28].mxu0 %v59_v61 }
  0xf5   :  { %v1866_v7 = vpop.f32.mrb[0].mxu0 }
  0xf6   :  { %v158_v8 = vpop.f32.mrb[1].mxu0  ;;  %v287_v10 = vmax.f32 %v1866_v7, 0.0 }
  0xf7   :  { %v1867_v9 = vpop.f32.mrb[2].mxu0  ;;  %v285_v13 = vmax.f32 %v158_v8, 0.0 }
  0xf8   :  { %v288_v11 = vmax.f32 %v1867_v9, 0.0  ;;  %v161_v12 = vpop.f32.mrb[3].mxu0 }
  0xf9   :  { %v286_v14 = vmax.f32 %v161_v12, 0.0 }
  0xfa   :  { %v318_v15 = vpack.c.bf16 %v288_v11, %v287_v10 }
  0xfb   :  { %v317_v16 = vpack.c.bf16 %v286_v14, %v285_v13 }
  0xfd   :  { %v1870_v17 = vpop.f32.mrb[4].mxu0  ;;  %1912 = vmatprep.mubr.bf16.mxu1 %v317_v16 }
  0xfe   :  { %v291_v18 = vmax.f32 %v1870_v17, 0.0  ;;  %v174_v19 = vpop.f32.mrb[5].mxu0  ;;  %1913 = vmatmul.mubr.bf16.vlgmr.msra.gmra.mrb[0].mxu1 %v318_v15 }
  0xff   :  { %v1871_v20 = vpop.f32.mrb[6].mxu0  ;;  %v289_v23 = vmax.f32 %v174_v19, 0.0 }
 0x100   :  { %v292_v21 = vmax.f32 %v1871_v20, 0.0  ;;  %v177_v22 = vpop.f32.mrb[7].mxu0 }
 0x101   :  { %v290_v24 = vmax.f32 %v177_v22, 0.0 }
 0x102   :  { %v320_v25 = vpack.c.bf16 %v292_v21, %v291_v18 }
 0x103   :  { %v319_v26 = vpack.c.bf16 %v290_v24, %v289_v23  ;;  %v2064_v23 = vld [vmem:[%s3519_s1 + $0xb8] sm:$0xff]   ;;  %v2065_v24 = vld [vmem:[%s3519_s1 + $0xc0] sm:$0xff]  }
 0x104   :  { %1958 = vmatprep.subr.bf16.mxu0 %v2064_v23  ;;  %1992 = vmatprep.subr.bf16.mxu1 %v2065_v24 }
 0x105   :  { %v1874_v27 = vpop.f32.mrb[8].mxu0  ;;  %1916 = vmatprep.mubr.bf16.mxu1 %v319_v26  ;;  %1959 = vmatpush3.bf16.msra.mxu0 %v2064_v23  ;;  %v2067_v26 = vld [vmem:[%s3519_s1 + $0xd0] sm:$0xff]  }
 0x106   :  { %v295_v28 = vmax.f32 %v1874_v27, 0.0  ;;  %v190_v29 = vpop.f32.mrb[9].mxu0  ;;  %1917 = vmatmul.mubr.bf16.gmra.mrb[4].mxu1 %v320_v25  ;;  %v2066_v25 = vld [vmem:[%s3519_s1 + $0xc8] sm:$0xff]   ;;  %v2068_v27 = vld [vmem:[%s3519_s1 + $0xd8] sm:$0xff]  }
 0x107   :  { %v1875_v30 = vpop.f32.mrb[10].mxu0  ;;  %v293_v33 = vmax.f32 %v190_v29, 0.0  ;;  %1993 = vmatpush3.bf16.msra.mxu1 %v2065_v24  ;;  %v2070_v29 = vld [vmem:[%s3519_s1 + $0xe8] sm:$0xff]  }
 0x108   :  { %v296_v31 = vmax.f32 %v1875_v30, 0.0  ;;  %v193_v32 = vpop.f32.mrb[11].mxu0  ;;  %1994 = vmatprep.subr.bf16.mxu1 %v2066_v25  ;;  %v2071_v30 = vld [vmem:[%s3519_s1 + $0xf0] sm:$0xff]  }
 0x109   :  { %v294_v34 = vmax.f32 %v193_v32, 0.0 }
 0x10a   :  { %v322_v35 = vpack.c.bf16 %v296_v31, %v295_v28  ;;  %v2069_v28 = vld [vmem:[%s3519_s1 + $0xe0] sm:$0xff]  }
 0x10b   :  { %v321_v36 = vpack.c.bf16 %v294_v34, %v293_v33  ;;  %1995 = vmatpush3.bf16.msra.mxu1 %v2066_v25 }
 0x10c   :  { %1996 = vmatprep.subr.bf16.mxu1 %v2067_v26 }
 0x10d   :  { %v1878_v37 = vpop.f32.mrb[12].mxu0  ;;  %1920 = vmatprep.mubr.bf16.mxu1 %v321_v36 }
 0x10e   :  { %v299_v38 = vmax.f32 %v1878_v37, 0.0  ;;  %v206_v39 = vpop.f32.mrb[13].mxu0  ;;  %1921 = vmatmul.mubr.bf16.gmra.mrb[8].mxu1 %v322_v35 }
 0x10f   :  { %v1879_v40 = vpop.f32.mrb[14].mxu0  ;;  %v297_v43 = vmax.f32 %v206_v39, 0.0  ;;  %1997 = vmatpush3.bf16.msra.mxu1 %v2067_v26 }
 0x110   :  { %v300_v41 = vmax.f32 %v1879_v40, 0.0  ;;  %v209_v42 = vpop.f32.mrb[15].mxu0  ;;  %1998 = vmatprep.subr.bf16.mxu1 %v2068_v27 }
 0x111   :  { %v298_v44 = vmax.f32 %v209_v42, 0.0 }
 0x112   :  { %v324_v45 = vpack.c.bf16 %v300_v41, %v299_v38 }
 0x113   :  { %v323_v46 = vpack.c.bf16 %v298_v44, %v297_v43  ;;  %1999 = vmatpush3.bf16.msra.mxu1 %v2068_v27 }
 0x114   :  { %2000 = vmatprep.subr.bf16.mxu1 %v2069_v28 }
 0x115   :  { %v1882_v47 = vpop.f32.mrb[16].mxu0  ;;  %1924 = vmatprep.mubr.bf16.mxu1 %v323_v46 }
 0x116   :  { %v303_v48 = vmax.f32 %v1882_v47, 0.0  ;;  %v222_v49 = vpop.f32.mrb[17].mxu0  ;;  %1925 = vmatmul.mubr.bf16.gmra.mrb[12].mxu1 %v324_v45 }
 0x117   :  { %v1883_v50 = vpop.f32.mrb[18].mxu0  ;;  %v301_v53 = vmax.f32 %v222_v49, 0.0  ;;  %2001 = vmatpush3.bf16.msra.mxu1 %v2069_v28 }
 0x118   :  { %v304_v51 = vmax.f32 %v1883_v50, 0.0  ;;  %v225_v52 = vpop.f32.mrb[19].mxu0  ;;  %2002 = vmatprep.subr.bf16.mxu1 %v2070_v29 }
 0x119   :  { %v302_v54 = vmax.f32 %v225_v52, 0.0 }
 0x11a   :  { %v326_v55 = vpack.c.bf16 %v304_v51, %v303_v48 }
 0x11b   :  { %v325_v56 = vpack.c.bf16 %v302_v54, %v301_v53  ;;  %2003 = vmatpush3.bf16.msra.mxu1 %v2070_v29 }
 0x11c   :  { %2004 = vmatprep.subr.bf16.mxu1 %v2071_v30 }
 0x11d   :  { %v1886_v57 = vpop.f32.mrb[20].mxu0  ;;  %1928 = vmatprep.mubr.bf16.mxu1 %v325_v56 }
 0x11e   :  { %v307_v58 = vmax.f32 %v1886_v57, 0.0  ;;  %v238_v59 = vpop.f32.mrb[21].mxu0  ;;  %1929 = vmatmul.mubr.bf16.gmra.mrb[16].mxu1 %v326_v55 }
 0x11f   :  { %v1887_v60 = vpop.f32.mrb[22].mxu0  ;;  %v305_v63 = vmax.f32 %v238_v59, 0.0  ;;  %2005 = vmatpush3.bf16.msra.mxu1 %v2071_v30 }
 0x120   :  { %v308_v61 = vmax.f32 %v1887_v60, 0.0  ;;  %v241_v62 = vpop.f32.mrb[23].mxu0 }
 0x121   :  { %v306_v0 = vmax.f32 %v241_v62, 0.0 }
 0x122   :  { %v328_v1 = vpack.c.bf16 %v308_v61, %v307_v58 }
 0x123   :  { %v327_v2 = vpack.c.bf16 %v306_v0, %v305_v63 }
 0x125   :  { %v1890_v3 = vpop.f32.mrb[24].mxu0  ;;  %1932 = vmatprep.mubr.bf16.mxu1 %v327_v2 }
 0x126   :  { %v311_v4 = vmax.f32 %v1890_v3, 0.0  ;;  %v254_v5 = vpop.f32.mrb[25].mxu0  ;;  %1933 = vmatmul.mubr.bf16.gmra.mrb[20].mxu1 %v328_v1 }
 0x127   :  { %v1891_v6 = vpop.f32.mrb[26].mxu0  ;;  %v309_v9 = vmax.f32 %v254_v5, 0.0 }
 0x128   :  { %v312_v7 = vmax.f32 %v1891_v6, 0.0  ;;  %v257_v8 = vpop.f32.mrb[27].mxu0 }
 0x129   :  { %v310_v10 = vmax.f32 %v257_v8, 0.0 }
 0x12a   :  { %v330_v11 = vpack.c.bf16 %v312_v7, %v311_v4 }
 0x12b   :  { %v329_v12 = vpack.c.bf16 %v310_v10, %v309_v9 }
 0x12d   :  { %v1894_v13 = vpop.f32.mrb[28].mxu0  ;;  %1936 = vmatprep.mubr.bf16.mxu1 %v329_v12 }
 0x12e   :  { %v315_v14 = vmax.f32 %v1894_v13, 0.0  ;;  %v270_v15 = vpop.f32.mrb[29].mxu0  ;;  %1937 = vmatmul.mubr.bf16.gmra.mrb[24].mxu1 %v330_v11 }
 0x12f   :  { %v1895_v16 = vpop.f32.mrb[30].mxu0  ;;  %v313_v19 = vmax.f32 %v270_v15, 0.0 }
 0x130   :  { %v316_v17 = vmax.f32 %v1895_v16, 0.0  ;;  %v273_v18 = vpop.f32.mrb[31].mxu0 }
 0x131   :  { %v314_v20 = vmax.f32 %v273_v18, 0.0 }
 0x132   :  { %v332_v21 = vpack.c.bf16 %v316_v17, %v315_v14 }
 0x133   :  { %v331_v22 = vpack.c.bf16 %v314_v20, %v313_v19 }
 0x135   :  { %1940 = vmatprep.mubr.bf16.mxu1 %v331_v22 }
 0x136   :  { %1941 = vmatmul.mubr.bf16.gmra.mrb[28].mxu1 %v332_v21 }
 0x1d1   :  { %v1914_v31 = vpop.f32.mrb[0].mxu1 }
 0x1d2   :  { %v431_v32 = vpop.f32.mrb[1].mxu1  ;;  %v560_v34 = vmax.f32 %v1914_v31, 0.0 }
 0x1d3   :  { %v1915_v33 = vpop.f32.mrb[2].mxu1  ;;  %v558_v37 = vmax.f32 %v431_v32, 0.0 }
 0x1d4   :  { %v561_v35 = vmax.f32 %v1915_v33, 0.0  ;;  %v434_v36 = vpop.f32.mrb[3].mxu1 }
 0x1d5   :  { %v559_v38 = vmax.f32 %v434_v36, 0.0 }
 0x1d6   :  { %v591_v39 = vpack.c.bf16 %v561_v35, %v560_v34 }
 0x1d7   :  { %v590_v40 = vpack.c.bf16 %v559_v38, %v558_v37 }
 0x1d9   :  { %v1918_v41 = vpop.f32.mrb[4].mxu1  ;;  %1960 = vmatprep.mubr.bf16.mxu0 %v590_v40 }
 0x1da   :  { %v447_v42 = vpop.f32.mrb[5].mxu1  ;;  %1961 = vmatmul.mubr.bf16.vlgmr.msra.gmra.mrb[32].mxu0 %v591_v39  ;;  %v564_v44 = vmax.f32 %v1918_v41, 0.0 }
 0x1db   :  { %v1919_v43 = vpop.f32.mrb[6].mxu1  ;;  %v562_v47 = vmax.f32 %v447_v42, 0.0 }
 0x1dc   :  { %v565_v45 = vmax.f32 %v1919_v43, 0.0  ;;  %v450_v46 = vpop.f32.mrb[7].mxu1 }
 0x1dd   :  { %v563_v48 = vmax.f32 %v450_v46, 0.0 }
 0x1de   :  { %v593_v49 = vpack.c.bf16 %v565_v45, %v564_v44 }
 0x1df   :  { %v592_v50 = vpack.c.bf16 %v563_v48, %v562_v47  ;;  %v2072_v47 = vld [vmem:[%s3519_s1 + $0xf8] sm:$0xff]  }
 0x1e0   :  { %2006 = vmatprep.subr.bf16.mxu1 %v2072_v47 }
 0x1e1   :  { %v1922_v51 = vpop.f32.mrb[8].mxu1  ;;  %1964 = vmatprep.mubr.bf16.mxu0 %v592_v50  ;;  %2007 = vmatpush3.bf16.msra.mxu1 %v2072_v47 }
 0x1e2   :  { %v463_v52 = vpop.f32.mrb[9].mxu1  ;;  %1965 = vmatmul.mubr.bf16.gmra.mrb[36].mxu0 %v593_v49  ;;  %v568_v54 = vmax.f32 %v1922_v51, 0.0 }
 0x1e3   :  { %v1923_v53 = vpop.f32.mrb[10].mxu1  ;;  %v566_v57 = vmax.f32 %v463_v52, 0.0 }
 0x1e4   :  { %v569_v55 = vmax.f32 %v1923_v53, 0.0  ;;  %v466_v56 = vpop.f32.mrb[11].mxu1 }
 0x1e5   :  { %v567_v58 = vmax.f32 %v466_v56, 0.0 }
 0x1e6   :  { %v595_v59 = vpack.c.bf16 %v569_v55, %v568_v54 }
 0x1e7   :  { %v594_v60 = vpack.c.bf16 %v567_v58, %v566_v57 }
 0x1e9   :  { %v1926_v61 = vpop.f32.mrb[12].mxu1  ;;  %1968 = vmatprep.mubr.bf16.mxu0 %v594_v60 }
 0x1ea   :  { %v479_v62 = vpop.f32.mrb[13].mxu1  ;;  %1969 = vmatmul.mubr.bf16.gmra.mrb[40].mxu0 %v595_v59  ;;  %v572_v0 = vmax.f32 %v1926_v61, 0.0 }
 0x1eb   :  { %v1927_v63 = vpop.f32.mrb[14].mxu1  ;;  %v570_v3 = vmax.f32 %v479_v62, 0.0 }
 0x1ec   :  { %v573_v1 = vmax.f32 %v1927_v63, 0.0  ;;  %v482_v2 = vpop.f32.mrb[15].mxu1 }
 0x1ed   :  { %v571_v4 = vmax.f32 %v482_v2, 0.0 }
 0x1ee   :  { %v597_v5 = vpack.c.bf16 %v573_v1, %v572_v0 }
 0x1ef   :  { %v596_v6 = vpack.c.bf16 %v571_v4, %v570_v3 }
 0x1f1   :  { %v1930_v7 = vpop.f32.mrb[16].mxu1  ;;  %1972 = vmatprep.mubr.bf16.mxu0 %v596_v6 }
 0x1f2   :  { %v495_v8 = vpop.f32.mrb[17].mxu1  ;;  %1973 = vmatmul.mubr.bf16.gmra.mrb[44].mxu0 %v597_v5  ;;  %v576_v10 = vmax.f32 %v1930_v7, 0.0 }
 0x1f3   :  { %v1931_v9 = vpop.f32.mrb[18].mxu1  ;;  %v574_v13 = vmax.f32 %v495_v8, 0.0 }
 0x1f4   :  { %v577_v11 = vmax.f32 %v1931_v9, 0.0  ;;  %v498_v12 = vpop.f32.mrb[19].mxu1 }
 0x1f5   :  { %v575_v14 = vmax.f32 %v498_v12, 0.0 }
 0x1f6   :  { %v599_v15 = vpack.c.bf16 %v577_v11, %v576_v10 }
 0x1f7   :  { %v598_v16 = vpack.c.bf16 %v575_v14, %v574_v13 }
 0x1f9   :  { %v1934_v17 = vpop.f32.mrb[20].mxu1  ;;  %1976 = vmatprep.mubr.bf16.mxu0 %v598_v16 }
 0x1fa   :  { %v511_v18 = vpop.f32.mrb[21].mxu1  ;;  %1977 = vmatmul.mubr.bf16.gmra.mrb[48].mxu0 %v599_v15  ;;  %v580_v20 = vmax.f32 %v1934_v17, 0.0 }
 0x1fb   :  { %v1935_v19 = vpop.f32.mrb[22].mxu1  ;;  %v578_v23 = vmax.f32 %v511_v18, 0.0 }
 0x1fc   :  { %v581_v21 = vmax.f32 %v1935_v19, 0.0  ;;  %v514_v22 = vpop.f32.mrb[23].mxu1 }
 0x1fd   :  { %v579_v24 = vmax.f32 %v514_v22, 0.0 }
 0x1fe   :  { %v601_v25 = vpack.c.bf16 %v581_v21, %v580_v20 }
 0x1ff   :  { %v600_v26 = vpack.c.bf16 %v579_v24, %v578_v23 }
 0x201   :  { %v1938_v27 = vpop.f32.mrb[24].mxu1  ;;  %1980 = vmatprep.mubr.bf16.mxu0 %v600_v26 }
 0x202   :  { %v527_v28 = vpop.f32.mrb[25].mxu1  ;;  %1981 = vmatmul.mubr.bf16.gmra.mrb[52].mxu0 %v601_v25  ;;  %v584_v30 = vmax.f32 %v1938_v27, 0.0 }
 0x203   :  { %v1939_v29 = vpop.f32.mrb[26].mxu1  ;;  %v582_v33 = vmax.f32 %v527_v28, 0.0 }
 0x204   :  { %v585_v31 = vmax.f32 %v1939_v29, 0.0  ;;  %v530_v32 = vpop.f32.mrb[27].mxu1 }
 0x205   :  { %v583_v34 = vmax.f32 %v530_v32, 0.0 }
 0x206   :  { %v603_v35 = vpack.c.bf16 %v585_v31, %v584_v30 }
 0x207   :  { %v602_v36 = vpack.c.bf16 %v583_v34, %v582_v33 }
 0x209   :  { %v1942_v37 = vpop.f32.mrb[28].mxu1  ;;  %1984 = vmatprep.mubr.bf16.mxu0 %v602_v36 }
 0x20a   :  { %v543_v38 = vpop.f32.mrb[29].mxu1  ;;  %1985 = vmatmul.mubr.bf16.gmra.mrb[56].mxu0 %v603_v35  ;;  %v588_v40 = vmax.f32 %v1942_v37, 0.0 }
 0x20b   :  { %v1943_v39 = vpop.f32.mrb[30].mxu1  ;;  %v586_v43 = vmax.f32 %v543_v38, 0.0 }
 0x20c   :  { %v589_v41 = vmax.f32 %v1943_v39, 0.0  ;;  %v546_v42 = vpop.f32.mrb[31].mxu1 }
 0x20d   :  { %v587_v44 = vmax.f32 %v546_v42, 0.0 }
 0x20e   :  { %v605_v45 = vpack.c.bf16 %v589_v41, %v588_v40 }
 0x20f   :  { %v604_v46 = vpack.c.bf16 %v587_v44, %v586_v43 }
 0x211   :  { %1988 = vmatprep.mubr.bf16.mxu0 %v604_v46 }
 0x212   :  { %1989 = vmatmul.mubr.bf16.gmra.mrb[60].mxu0 %v605_v45 }
 0x2ad   :  { %v1962_v48 = vpop.f32.mrb[32].mxu0 }
 0x2ae   :  { %v704_v49 = vpop.f32.mrb[33].mxu0  ;;  %v833_v51 = vmax.f32 %v1962_v48, 0.0 }
 0x2af   :  { %v1963_v50 = vpop.f32.mrb[34].mxu0  ;;  %v831_v54 = vmax.f32 %v704_v49, 0.0 }
 0x2b0   :  { %v834_v52 = vmax.f32 %v1963_v50, 0.0  ;;  %v707_v53 = vpop.f32.mrb[35].mxu0 }
 0x2b1   :  { %v832_v55 = vmax.f32 %v707_v53, 0.0 }
 0x2b2   :  { %v864_v56 = vpack.c.bf16 %v834_v52, %v833_v51 }
 0x2b3   :  { %v863_v57 = vpack.c.bf16 %v832_v55, %v831_v54 }
 0x2b5   :  { %v1966_v58 = vpop.f32.mrb[36].mxu0  ;;  %2008 = vmatprep.mubr.bf16.mxu1 %v863_v57 }
 0x2b6   :  { %v720_v59 = vpop.f32.mrb[37].mxu0  ;;  %2009 = vmatmul.mubr.bf16.vlgmr.msra.gmra.mrb[32].mxu1 %v864_v56  ;;  %v837_v61 = vmax.f32 %v1966_v58, 0.0 }
 0x2b7   :  { %v1967_v60 = vpop.f32.mrb[38].mxu0  ;;  %v835_v0 = vmax.f32 %v720_v59, 0.0 }
 0x2b8   :  { %v838_v62 = vmax.f32 %v1967_v60, 0.0  ;;  %v723_v63 = vpop.f32.mrb[39].mxu0 }
 0x2b9   :  { %v836_v1 = vmax.f32 %v723_v63, 0.0 }
 0x2ba   :  { %v866_v2 = vpack.c.bf16 %v838_v62, %v837_v61 }
 0x2bb   :  { %v865_v3 = vpack.c.bf16 %v836_v1, %v835_v0  ;;  %v1104_v0 = vlaneseq }
 0x2bd   :  { %v1970_v4 = vpop.f32.mrb[40].mxu0  ;;  %2012 = vmatprep.mubr.bf16.mxu1 %v865_v3  ;;  %v2505_v1 = vand.u32 127, %v1104_v0 }
 0x2be   :  { %v736_v5 = vpop.f32.mrb[41].mxu0  ;;  %2013 = vmatmul.mubr.bf16.gmra.mrb[36].mxu1 %v866_v2  ;;  %v841_v7 = vmax.f32 %v1970_v4, 0.0 }
 0x2bf   :  { %v1971_v6 = vpop.f32.mrb[42].mxu0  ;;  %v839_v10 = vmax.f32 %v736_v5, 0.0  ;;  %vm1106_vm0 = vcmp.lt.s32.totalorder %v2505_v1, 9 }
 0x2c0   :  { %v842_v8 = vmax.f32 %v1971_v6, 0.0  ;;  %v739_v9 = vpop.f32.mrb[43].mxu0 }
 0x2c1   :  { %v840_v11 = vmax.f32 %v739_v9, 0.0 }
 0x2c2   :  { %v868_v12 = vpack.c.bf16 %v842_v8, %v841_v7 }
 0x2c3   :  { %v867_v13 = vpack.c.bf16 %v840_v11, %v839_v10 }
 0x2c5   :  { %v1974_v14 = vpop.f32.mrb[44].mxu0  ;;  %2016 = vmatprep.mubr.bf16.mxu1 %v867_v13 }
 0x2c6   :  { %v752_v15 = vpop.f32.mrb[45].mxu0  ;;  %2017 = vmatmul.mubr.bf16.gmra.mrb[40].mxu1 %v868_v12  ;;  %v845_v17 = vmax.f32 %v1974_v14, 0.0 }
 0x2c7   :  { %v1975_v16 = vpop.f32.mrb[46].mxu0  ;;  %v843_v20 = vmax.f32 %v752_v15, 0.0 }
 0x2c8   :  { %v846_v18 = vmax.f32 %v1975_v16, 0.0  ;;  %v755_v19 = vpop.f32.mrb[47].mxu0 }
 0x2c9   :  { %v844_v21 = vmax.f32 %v755_v19, 0.0 }
 0x2ca   :  { %v870_v22 = vpack.c.bf16 %v846_v18, %v845_v17 }
 0x2cb   :  { %v869_v23 = vpack.c.bf16 %v844_v21, %v843_v20 }
 0x2cd   :  { %v1978_v24 = vpop.f32.mrb[48].mxu0  ;;  %2020 = vmatprep.mubr.bf16.mxu1 %v869_v23 }
 0x2ce   :  { %v768_v25 = vpop.f32.mrb[49].mxu0  ;;  %2021 = vmatmul.mubr.bf16.gmra.mrb[44].mxu1 %v870_v22  ;;  %v849_v27 = vmax.f32 %v1978_v24, 0.0 }
 0x2cf   :  { %v1979_v26 = vpop.f32.mrb[50].mxu0  ;;  %v847_v30 = vmax.f32 %v768_v25, 0.0 }
 0x2d0   :  { %v850_v28 = vmax.f32 %v1979_v26, 0.0  ;;  %v771_v29 = vpop.f32.mrb[51].mxu0 }
 0x2d1   :  { %v848_v31 = vmax.f32 %v771_v29, 0.0 }
 0x2d2   :  { %v872_v32 = vpack.c.bf16 %v850_v28, %v849_v27 }
 0x2d3   :  { %v871_v33 = vpack.c.bf16 %v848_v31, %v847_v30 }
 0x2d5   :  { %v1982_v34 = vpop.f32.mrb[52].mxu0  ;;  %2024 = vmatprep.mubr.bf16.mxu1 %v871_v33 }
 0x2d6   :  { %v784_v35 = vpop.f32.mrb[53].mxu0  ;;  %2025 = vmatmul.mubr.bf16.gmra.mrb[48].mxu1 %v872_v32  ;;  %v853_v37 = vmax.f32 %v1982_v34, 0.0 }
 0x2d7   :  { %v1983_v36 = vpop.f32.mrb[54].mxu0  ;;  %v851_v40 = vmax.f32 %v784_v35, 0.0 }
 0x2d8   :  { %v854_v38 = vmax.f32 %v1983_v36, 0.0  ;;  %v787_v39 = vpop.f32.mrb[55].mxu0 }
 0x2d9   :  { %v852_v41 = vmax.f32 %v787_v39, 0.0 }
 0x2da   :  { %v874_v42 = vpack.c.bf16 %v854_v38, %v853_v37 }
 0x2db   :  { %v873_v43 = vpack.c.bf16 %v852_v41, %v851_v40 }
 0x2dd   :  { %v1986_v44 = vpop.f32.mrb[56].mxu0  ;;  %2028 = vmatprep.mubr.bf16.mxu1 %v873_v43 }
 0x2de   :  { %v800_v45 = vpop.f32.mrb[57].mxu0  ;;  %2029 = vmatmul.mubr.bf16.gmra.mrb[52].mxu1 %v874_v42  ;;  %v857_v47 = vmax.f32 %v1986_v44, 0.0 }
 0x2df   :  { %v1987_v46 = vpop.f32.mrb[58].mxu0  ;;  %v855_v50 = vmax.f32 %v800_v45, 0.0 }
 0x2e0   :  { %v858_v48 = vmax.f32 %v1987_v46, 0.0  ;;  %v803_v49 = vpop.f32.mrb[59].mxu0 }
 0x2e1   :  { %v856_v51 = vmax.f32 %v803_v49, 0.0 }
 0x2e2   :  { %v876_v52 = vpack.c.bf16 %v858_v48, %v857_v47 }
 0x2e3   :  { %v875_v53 = vpack.c.bf16 %v856_v51, %v855_v50 }
 0x2e5   :  { %v1990_v54 = vpop.f32.mrb[60].mxu0  ;;  %2032 = vmatprep.mubr.bf16.mxu1 %v875_v53 }
 0x2e6   :  { %v816_v55 = vpop.f32.mrb[61].mxu0  ;;  %2033 = vmatmul.mubr.bf16.gmra.mrb[56].mxu1 %v876_v52  ;;  %v861_v57 = vmax.f32 %v1990_v54, 0.0 }
 0x2e7   :  { %v1991_v56 = vpop.f32.mrb[62].mxu0  ;;  %v859_v60 = vmax.f32 %v816_v55, 0.0 }
 0x2e8   :  { %v862_v58 = vmax.f32 %v1991_v56, 0.0  ;;  %v819_v59 = vpop.f32.mrb[63].mxu0 }
 0x2e9   :  { %v860_v61 = vmax.f32 %v819_v59, 0.0 }
 0x2ea   :  { %v878_v62 = vpack.c.bf16 %v862_v58, %v861_v57 }
 0x2eb   :  { %v877_v63 = vpack.c.bf16 %v860_v61, %v859_v60 }
 0x2ed   :  { %2036 = vmatprep.mubr.bf16.mxu1 %v877_v63 }
 0x2ee   :  { %2037 = vmatmul.mubr.bf16.gmra.mrb[60].mxu1 %v878_v62 }
 0x389   :  { %v2508_v2 = vpop.f32.mrb[32].mxu1 }
 0x38a   :  { %v2510_v3 = vpop.f32.mrb[33].mxu1  ;;  %v1237_v4 = vsel %vm1106_vm0, %v2508_v2, -1e+30 }
 0x38b   :  { %1271 = vmax.xlane.f32.xlu1 %v1237_v4  ;;  %v2515_v5 = vpop.f32.mrb[34].mxu1  ;;  %v1235_v6 = vsel %vm1106_vm0, %v2510_v3, -1e+30 }
 0x38c   :  { %1267 = vmax.xlane.f32.xlu0 %v1235_v6  ;;  %v2520_v7 = vpop.f32.mrb[35].mxu1  ;;  %v1238_v8 = vsel %vm1106_vm0, %v2515_v5, -1e+30 }
 0x38d   :  { %v1236_v9 = vsel %vm1106_vm0, %v2520_v7, -1e+30 }
 0x38f   :  { %1273 = vmax.xlane.f32.xlu1 %v1238_v8 }
 0x390   :  { %1269 = vmax.xlane.f32.xlu0 %v1236_v9 }
 0x391   :  { %v2528_v10 = vpop.f32.mrb[36].mxu1 }
 0x392   :  { %v2530_v11 = vpop.f32.mrb[37].mxu1  ;;  %v1241_v12 = vsel %vm1106_vm0, %v2528_v10, -1e+30 }
 0x393   :  { %v2535_v13 = vpop.f32.mrb[38].mxu1  ;;  %v1239_v16 = vsel %vm1106_vm0, %v2530_v11, -1e+30 }
 0x394   :  { %1279 = vmax.xlane.f32.xlu0 %v1241_v12  ;;  %v2537_v14 = vpop.f32.mrb[39].mxu1  ;;  %v1242_v15 = vsel %vm1106_vm0, %v2535_v13, -1e+30 }
 0x395   :  { %1281 = vmax.xlane.f32.xlu1 %v1242_v15  ;;  %v1240_v17 = vsel %vm1106_vm0, %v2537_v14, -1e+30 }
 0x398   :  { %1275 = vmax.xlane.f32.xlu0 %v1239_v16  ;;  %v2265_v16 = vld [vmem:[%s3520_s0 + $0x10] sm:$0xff] }
 0x399   :  { %1277 = vmax.xlane.f32.xlu1 %v1240_v17  ;;  %v2548_v18 = vpop.f32.mrb[40].mxu1  ;;  %v1109_v17 = vand.u32 2147483647, %v2265_v16 }
 0x39a   :  { %v2550_v19 = vpop.f32.mrb[41].mxu1  ;;  %v1245_v20 = vsel %vm1106_vm0, %v2548_v18, -1e+30 }
 0x39b   :  { %v2555_v21 = vpop.f32.mrb[42].mxu1  ;;  %v1243_v24 = vsel %vm1106_vm0, %v2550_v19, -1e+30  ;;  %vm1141_vm1 = vcmp.ne.f32.partialorder %v1109_v17, 1.0 }
 0x39c   :  { %1287 = vmax.xlane.f32.xlu0 %v1245_v20  ;;  %v2557_v22 = vpop.f32.mrb[43].mxu1  ;;  %v1246_v23 = vsel %vm1106_vm0, %v2555_v21, -1e+30  ;;  %v2266_v20 = vld [vmem:[%s3520_s0] sm:$0xff]  ;;  %vm1173_vm3 = vmand %vm1106_vm0, %vm1141_vm1 }
 0x39d   :  { %1289 = vmax.xlane.f32.xlu1 %v1246_v23  ;;  %v1244_v25 = vsel %vm1106_vm0, %v2557_v22, -1e+30  ;;  %v1107_v23 = vand.u32 2147483647, %v2266_v20 }
 0x39f   :  { %vm1139_vm2 = vcmp.ne.f32.partialorder %v1107_v23, 1.0  ;;  %v2270_v23 = vld [vmem:[%s3520_s0 + $0x38] sm:$0xff] }
 0x3a0   :  { %1283 = vmax.xlane.f32.xlu0 %v1243_v24  ;;  %vm1171_vm4 = vmand %vm1106_vm0, %vm1139_vm2 }
 0x3a1   :  { %1285 = vmax.xlane.f32.xlu1 %v1244_v25  ;;  %v2568_v26 = vpop.f32.mrb[44].mxu1 }
 0x3a2   :  { %v2570_v27 = vpop.f32.mrb[45].mxu1  ;;  %v1249_v28 = vsel %vm1106_vm0, %v2568_v26, -1e+30 }
 0x3a3   :  { %v2575_v29 = vpop.f32.mrb[46].mxu1  ;;  %v1247_v32 = vsel %vm1106_vm0, %v2570_v27, -1e+30 }
 0x3a4   :  { %1295 = vmax.xlane.f32.xlu0 %v1249_v28  ;;  %v2577_v30 = vpop.f32.mrb[47].mxu1  ;;  %v1250_v31 = vsel %vm1106_vm0, %v2575_v29, -1e+30 }
 0x3a5   :  { %1297 = vmax.xlane.f32.xlu1 %v1250_v31  ;;  %v1248_v33 = vsel %vm1106_vm0, %v2577_v30, -1e+30 }
 0x3a8   :  { %1291 = vmax.xlane.f32.xlu0 %v1247_v32 }
 0x3a9   :  { %1293 = vmax.xlane.f32.xlu1 %v1248_v33  ;;  %v2588_v34 = vpop.f32.mrb[48].mxu1 }
 0x3aa   :  { %v2590_v35 = vpop.f32.mrb[49].mxu1  ;;  %v1253_v36 = vsel %vm1106_vm0, %v2588_v34, -1e+30 }
 0x3ab   :  { %3538 = vst [vmem:[#allocation2_spill] sm:$0xff] %v2590_v35  ;;  %v2595_v37 = vpop.f32.mrb[50].mxu1  ;;  %v1251_v40 = vsel %vm1106_vm0, %v2590_v35, -1e+30 }
 0x3ac   :  { %3539 = vst [vmem:[#allocation3_spill] sm:$0xff] %v2595_v37  ;;  %1303 = vmax.xlane.f32.xlu0 %v1253_v36  ;;  %v2597_v38 = vpop.f32.mrb[51].mxu1  ;;  %v1254_v39 = vsel %vm1106_vm0, %v2595_v37, -1e+30  ;;  %v2267_v36 = vld [vmem:[%s3520_s0 + $0x18] sm:$0xff] }
 0x3ad   :  { %3540 = vst [vmem:[#allocation4_spill] sm:$0xff] %v2597_v38  ;;  %1305 = vmax.xlane.f32.xlu1 %v1254_v39  ;;  %v1252_v41 = vsel %vm1106_vm0, %v2597_v38, -1e+30  ;;  %v1110_v39 = vand.u32 2147483647, %v2267_v36 }
 0x3af   :  { %vm1142_vm5 = vcmp.ne.f32.partialorder %v1110_v39, 1.0 }
 0x3b0   :  { %1299 = vmax.xlane.f32.xlu0 %v1251_v40  ;;  %v2268_v40 = vld [vmem:[%s3520_s0 + $0x8] sm:$0xff]  ;;  %vm2702_vm7 = vmand %vm1106_vm0, %vm1142_vm5 }
 0x3b1   :  { %1301 = vmax.xlane.f32.xlu1 %v1252_v41  ;;  %v2608_v42 = vpop.f32.mrb[52].mxu1  ;;  %v1108_v41 = vand.u32 2147483647, %v2268_v40 }
 0x3b2   :  { %3541 = vst [vmem:[#allocation5_spill] sm:$0xff] %v2608_v42  ;;  %v2610_v43 = vpop.f32.mrb[53].mxu1  ;;  %v1257_v44 = vsel %vm1106_vm0, %v2608_v42, -1e+30 }
 0x3b3   :  { %v2615_v45 = vpop.f32.mrb[54].mxu1  ;;  %v1255_v48 = vsel %vm1106_vm0, %v2610_v43, -1e+30  ;;  %vm2690_vm6 = vcmp.ne.f32.partialorder %v1108_v41, 1.0 }
 0x3b4   :  { %3542 = vst [vmem:[#allocation6_spill] sm:$0xff] %v2615_v45  ;;  %1311 = vmax.xlane.f32.xlu0 %v1257_v44  ;;  %v2617_v46 = vpop.f32.mrb[55].mxu1  ;;  %v1258_v47 = vsel %vm1106_vm0, %v2615_v45, -1e+30  ;;  %vm2711_vm8 = vmand %vm1106_vm0, %vm2690_vm6 }
 0x3b5   :  { %3543 = vst [vmem:[#allocation7_spill] sm:$0xff] %v2617_v46  ;;  %1313 = vmax.xlane.f32.xlu1 %v1258_v47  ;;  %v1256_v49 = vsel %vm1106_vm0, %v2617_v46, -1e+30 }
 0x3b8   :  { %1307 = vmax.xlane.f32.xlu0 %v1255_v48 }
 0x3b9   :  { %1309 = vmax.xlane.f32.xlu1 %v1256_v49  ;;  %v2628_v50 = vpop.f32.mrb[56].mxu1 }
 0x3ba   :  { %3544 = vst [vmem:[#allocation8_spill] sm:$0xff] %v2628_v50  ;;  %v2630_v51 = vpop.f32.mrb[57].mxu1  ;;  %v1261_v52 = vsel %vm1106_vm0, %v2628_v50, -1e+30 }
 0x3bb   :  { %3545 = vst [vmem:[#allocation9_spill] sm:$0xff] %v2630_v51  ;;  %v2635_v53 = vpop.f32.mrb[58].mxu1  ;;  %v1259_v56 = vsel %vm1106_vm0, %v2630_v51, -1e+30 }
 0x3bc   :  { %3546 = vst [vmem:[#allocation10_spill] sm:$0xff] %v2635_v53  ;;  %1319 = vmax.xlane.f32.xlu0 %v1261_v52  ;;  %v2637_v54 = vpop.f32.mrb[59].mxu1  ;;  %v1262_v55 = vsel %vm1106_vm0, %v2635_v53, -1e+30 }
 0x3bd   :  { %3547 = vst [vmem:[#allocation11_spill] sm:$0xff] %v2637_v54  ;;  %1321 = vmax.xlane.f32.xlu1 %v1262_v55  ;;  %v1260_v57 = vsel %vm1106_vm0, %v2637_v54, -1e+30 }
 0x3c0   :  { %1315 = vmax.xlane.f32.xlu0 %v1259_v56 }
 0x3c1   :  { %1317 = vmax.xlane.f32.xlu1 %v1260_v57  ;;  %v2648_v58 = vpop.f32.mrb[60].mxu1  ;;  %v2269_v57 = vld [vmem:[%s3520_s0 + $0x30] sm:$0xff] }
 0x3c2   :  { %3548 = vst [vmem:[#allocation12_spill] sm:$0xff] %v2648_v58  ;;  %v2650_v59 = vpop.f32.mrb[61].mxu1  ;;  %v1265_v0 = vsel %vm1106_vm0, %v2648_v58, -1e+30 }
 0x3c3   :  { %3549 = vst [vmem:[#allocation13_spill] sm:$0xff] %v2650_v59  ;;  %v2652_v60 = vpop.f32.mrb[62].mxu1  ;;  %v1263_v61 = vsel %vm1106_vm0, %v2650_v59, -1e+30 }
 0x3c4   :  { %1323 = vmax.xlane.f32.xlu0 %v1263_v61  ;;  %v2657_v62 = vpop.f32.mrb[63].mxu1  ;;  %v1266_v4 = vsel %vm1106_vm0, %v2652_v60, -1e+30  ;;  %v1113_v61 = vand.u32 2147483647, %v2269_v57 }
 0x3c5   :  { %3550 = vst [vmem:[#allocation14_spill] sm:$0xff] %v2657_v62  ;;  %v1264_v63 = vsel %vm1106_vm0, %v2657_v62, -1e+30 }
 0x3c6   :  { %1325 = vmax.xlane.f32.xlu1 %v1264_v63  ;;  %vm2720_vm9 = vcmp.ne.f32.partialorder %v1113_v61, 1.0  ;;  %v2272_v61 = vld [vmem:[%s3520_s0 + $0x28] sm:$0xff] }
 0x3c7   :  { %vm2742_vm10 = vmand %vm1106_vm0, %vm2720_vm9 }
 0x3c8   :  { %1327 = vmax.xlane.f32.xlu0 %v1265_v0 }
 0x3ca   :  { %1329 = vmax.xlane.f32.xlu1 %v1266_v4  ;;  %v3522_v4 = vmov 0.0  }
 0x418   :  { %v1272_v6 = vpop.xlane.xlu1 %1271 }
 0x419   :  { %v1333_v8 = vsub.f32 %v2508_v2, %v1272_v6  ;;  %v1268_v9 = vpop.xlane.xlu0 %1267  ;;  %v1205_v6 = vsel %vm1173_vm3, 1.0, %v3522_v4 }
 0x41a   :  { %v1331_v12 = vsub.f32 %v2510_v3, %v1268_v9 }
 0x41b   :  { %v1367_v15 = vmul.f32 1.442695, %v1333_v8 }
 0x41c   :  { %v1363_v24 = vmul.f32 1.442695, %v1331_v12  ;;  %v1274_v25 = vpop.xlane.xlu1 %1273  ;;  %v1203_v12 = vsel %vm1171_vm4, 1.0, %v3522_v4 }
 0x41d   :  { %2073 = vpow2.f32 %v1367_v15  ;;  %v1334_v28 = vsub.f32 %v2515_v5, %v1274_v25  ;;  %v1270_v31 = vpop.xlane.xlu0 %1269 }
 0x41e   :  { %2075 = vpow2.f32 %v1363_v24  ;;  %v1332_v32 = vsub.f32 %v2520_v7, %v1270_v31  ;;  %v1114_v24 = vand.u32 2147483647, %v2270_v23 }
 0x41f   :  { %v1369_v33 = vmul.f32 1.442695, %v1334_v28 }
 0x420   :  { %v1365_v44 = vmul.f32 1.442695, %v1332_v32  ;;  %vm2746_vm11 = vcmp.ne.f32.partialorder %v1114_v24, 1.0 }
 0x421   :  { %2077 = vpow2.f32 %v1369_v33  ;;  %v1280_v47 = vpop.xlane.xlu0 %1279  ;;  %v2271_v33 = vld [vmem:[%s3520_s0 + $0x20] sm:$0xff]  ;;  %vm2774_vm13 = vmand %vm1106_vm0, %vm2746_vm11 }
 0x422   :  { %2079 = vpow2.f32 %v1365_v44  ;;  %v1337_v48 = vsub.f32 %v2528_v10, %v1280_v47  ;;  %v1282_v49 = vpop.xlane.xlu1 %1281  ;;  %v1111_v36 = vand.u32 2147483647, %v2271_v33  ;;  %v1206_v44 = vsel %vm2702_vm7, 1.0, %v3522_v4 }
 0x423   :  { %v1338_v52 = vsub.f32 %v2535_v13, %v1282_v49  ;;  %v1204_v49 = vsel %vm2711_vm8, 1.0, %v3522_v4 }
 0x424   :  { %v1375_v56 = vmul.f32 1.442695, %v1337_v48  ;;  %vm2755_vm12 = vcmp.ne.f32.partialorder %v1111_v36, 1.0  ;;  %v2277_v36 = vld [vmem:[%s3520_s0 + $0x70] sm:$0xff] }
 0x425   :  { %v1377_v63 = vmul.f32 1.442695, %v1338_v52  ;;  %v1276_v0 = vpop.xlane.xlu0 %1275  ;;  %vm2783_vm14 = vmand %vm1106_vm0, %vm2755_vm12 }
 0x426   :  { %2081 = vpow2.f32 %v1375_v56  ;;  %v1335_v8 = vsub.f32 %v2530_v11, %v1276_v0  ;;  %v1278_v9 = vpop.xlane.xlu1 %1277 }
 0x427   :  { %v2074_v16 = vpop.eup %2073  ;;  %2083 = vpow2.f32 %v1377_v63  ;;  %v1336_v17 = vsub.f32 %v2537_v14, %v1278_v9  ;;  %v1112_v63 = vand.u32 2147483647, %v2272_v61  ;;  %v1207_v9 = vsel %vm2783_vm14, 1.0, %v3522_v4 }
 0x428   :  { %v2076_v25 = vpop.eup %2075  ;;  %v1371_v28 = vmul.f32 1.442695, %v1335_v8  ;;  %v2718_v31 = vmul.f32 %v2074_v16, %v1205_v6 }
 0x429   :  { %v1373_v39 = vmul.f32 1.442695, %v1336_v17  ;;  %v1288_v40 = vpop.xlane.xlu0 %1287  ;;  %v2727_v41 = vmul.f32 %v2076_v25, %v1203_v12  ;;  %v2273_v12 = vld [vmem:[%s3520_s0 + $0x50] sm:$0xff]  ;;  %v1209_v25 = vsel %vm2742_vm10, 1.0, %v3522_v4  ;;  %vm2787_vm15 = vcmp.ne.f32.partialorder %v1112_v63, 1.0 }
 0x42a   :  { %2085 = vpow2.f32 %v1371_v28  ;;  %v1341_v47 = vsub.f32 %v2548_v18, %v1288_v40  ;;  %v1290_v48 = vpop.xlane.xlu1 %1289  ;;  %1463 = vadd.xlane.f32.xlu0 %v2718_v31  ;;  %v1117_v15 = vand.u32 2147483647, %v2273_v12  ;;  %v1210_v63 = vsel %vm2774_vm13, 1.0, %v3522_v4  ;;  %vm2815_vm2 = vmand %vm1106_vm0, %vm2787_vm15 }
 0x42b   :  { %v2078_v52 = vpop.eup %2077  ;;  %2087 = vpow2.f32 %v1373_v39  ;;  %v1342_v55 = vsub.f32 %v2555_v21, %v1290_v48  ;;  %v2274_v39 = vld [vmem:[%s3520_s0 + $0x58] sm:$0xff] }
 0x42c   :  { %v2080_v0 = vpop.eup %2079  ;;  %v1383_v6 = vmul.f32 1.442695, %v1341_v47  ;;  %v2753_v8 = vmul.f32 %v2078_v52, %v1206_v44  ;;  %v1118_v40 = vand.u32 2147483647, %v2274_v39  ;;  %vm2794_vm1 = vcmp.ne.f32.partialorder %v1117_v15, 1.0 }
 0x42d   :  { %v1385_v16 = vmul.f32 1.442695, %v1342_v55  ;;  %v1284_v17 = vpop.xlane.xlu0 %1283  ;;  %v2762_v20 = vmul.f32 %v2080_v0, %v1204_v49  ;;  %v2275_v49 = vld [vmem:[%s3520_s0 + $0x40] sm:$0xff]  ;;  %vm2825_vm3 = vmand %vm1106_vm0, %vm2794_vm1  ;;  %v1121_v39 = vand.u32 2147483647, %v2277_v36 }
 0x42e   :  { %2089 = vpow2.f32 %v1383_v6  ;;  %v1339_v23 = vsub.f32 %v2550_v19, %v1284_v17  ;;  %v1286_v24 = vpop.xlane.xlu1 %1285  ;;  %1459 = vadd.xlane.f32.xlu0 %v2727_v41  ;;  %1465 = vadd.xlane.f32.xlu1 %v2753_v8  ;;  %v1115_v52 = vand.u32 2147483647, %v2275_v49  ;;  %vm2829_vm4 = vcmp.ne.f32.partialorder %v1118_v40, 1.0 }
 0x42f   :  { %2091 = vpow2.f32 %v1385_v16  ;;  %v1340_v32 = vsub.f32 %v2557_v22, %v1286_v24  ;;  %v1208_v49 = vsel %vm2815_vm2, 1.0, %v3522_v4  ;;  %vm2859_vm6 = vmand %vm1106_vm0, %vm2829_vm4  ;;  %vm2882_vm9 = vcmp.ne.f32.partialorder %v1121_v39, 1.0 }
 0x430   :  { %v2082_v44 = vpop.eup %2081  ;;  %v1379_v47 = vmul.f32 1.442695, %v1339_v23  ;;  %v2276_v23 = vld [vmem:[%s3520_s0 + $0x48] sm:$0xff]  ;;  %vm2838_vm5 = vcmp.ne.f32.partialorder %v1115_v52, 1.0  ;;  %vm2913_vm11 = vmand %vm1106_vm0, %vm2882_vm9 }
 0x431   :  { %v2084_v55 = vpop.eup %2083  ;;  %v1381_v56 = vmul.f32 1.442695, %v1340_v32  ;;  %v1296_v57 = vpop.xlane.xlu0 %1295  ;;  %v2801_v61 = vmul.f32 %v2082_v44, %v1209_v25  ;;  %v1116_v24 = vand.u32 2147483647, %v2276_v23  ;;  %vm2869_vm7 = vmand %vm1106_vm0, %vm2838_vm5 }
 0x432   :  { %2093 = vpow2.f32 %v1379_v47  ;;  %v1345_v0 = vsub.f32 %v2568_v26, %v1296_v57  ;;  %v1298_v6 = vpop.xlane.xlu1 %1297  ;;  %1461 = vadd.xlane.f32.xlu1 %v2762_v20  ;;  %v2836_v32 = vmul.f32 %v2084_v55, %v1210_v63  ;;  %v2282_v57 = vld [vmem:[%s3520_s0 + $0x98] sm:$0xff] }
 0x433   :  { %2095 = vpow2.f32 %v1381_v56  ;;  %v1346_v15 = vsub.f32 %v2575_v29, %v1298_v6  ;;  %1471 = vadd.xlane.f32.xlu0 %v2801_v61  ;;  %v1213_v56 = vsel %vm2825_vm3, 1.0, %v3522_v4  ;;  %vm2873_vm8 = vcmp.ne.f32.partialorder %v1116_v24, 1.0  ;;  %v2279_v24 = vld [vmem:[%s3520_s0 + $0x60] sm:$0xff] }
 0x434   :  { %v2086_v25 = vpop.eup %2085  ;;  %v1391_v28 = vmul.f32 1.442695, %v1345_v0  ;;  %vm2903_vm10 = vmand %vm1106_vm0, %vm2873_vm8 }
 0x435   :  { %v2088_v40 = vpop.eup %2087  ;;  %v1393_v44 = vmul.f32 1.442695, %v1346_v15  ;;  %v1292_v47 = vpop.xlane.xlu0 %1291  ;;  %v2845_v48 = vmul.f32 %v2086_v25, %v1207_v9  ;;  %v2278_v9 = vld [vmem:[%s3520_s0 + $0x78] sm:$0xff]  ;;  %v1119_v25 = vand.u32 2147483647, %v2279_v24 }
 0x436   :  { %2097 = vpow2.f32 %v1391_v28  ;;  %v1343_v52 = vsub.f32 %v2570_v27, %v1292_v47  ;;  %v1294_v55 = vpop.xlane.xlu1 %1293  ;;  %1473 = vadd.xlane.f32.xlu1 %v2836_v32  ;;  %v1122_v12 = vand.u32 2147483647, %v2278_v9  ;;  %v2880_v17 = vmul.f32 %v2088_v40, %v1208_v49 }
 0x437   :  { %2099 = vpow2.f32 %v1393_v44  ;;  %v1344_v63 = vsub.f32 %v2577_v30, %v1294_v55  ;;  %1467 = vadd.xlane.f32.xlu0 %v2845_v48  ;;  %v1214_v47 = vsel %vm2859_vm6, 1.0, %v3522_v4  ;;  %v1211_v49 = vsel %vm2869_vm7, 1.0, %v3522_v4 }
 0x438   :  { %v2090_v15 = vpop.eup %2089  ;;  %v1387_v16 = vmul.f32 1.442695, %v1343_v52  ;;  %vm2917_vm12 = vcmp.ne.f32.partialorder %v1122_v12, 1.0  ;;  %vm2926_vm13 = vcmp.ne.f32.partialorder %v1119_v25, 1.0  ;;  %v2281_v12 = vld [vmem:[%s3520_s0 + $0x90] sm:$0xff] }
 0x439   :  { %v2092_v28 = vpop.eup %2091  ;;  %v1389_v33 = vmul.f32 1.442695, %v1344_v63  ;;  %v1304_v36 = vpop.xlane.xlu0 %1303  ;;  %v2889_v44 = vmul.f32 %v2090_v15, %v1213_v56  ;;  %v2280_v63 = vld [vmem:[%s3520_s0 + $0x68] sm:$0xff]  ;;  %v1125_v23 = vand.u32 2147483647, %v2281_v12  ;;  %vm2947_vm14 = vmand %vm1106_vm0, %vm2917_vm12  ;;  %v2287_v56 = vld [vmem:[%s3520_s0 + $0xa0] sm:$0xff] }
 0x43a   :  { %2101 = vpow2.f32 %v1387_v16  ;;  %v1349_v39 = vsub.f32 %v2588_v34, %v1304_v36  ;;  %v1306_v40 = vpop.xlane.xlu1 %1305  ;;  %1469 = vadd.xlane.f32.xlu1 %v2880_v17  ;;  %v1120_v0 = vand.u32 2147483647, %v2280_v63  ;;  %v2924_v15 = vmul.f32 %v2092_v28, %v1214_v47  ;;  %vm2957_vm15 = vmand %vm1106_vm0, %vm2926_vm13 }
 0x43b   :  { %2103 = vpow2.f32 %v1389_v33  ;;  %v1350_v55 = vsub.f32 %v2595_v37, %v1306_v40  ;;  %1479 = vadd.xlane.f32.xlu0 %v2889_v44  ;;  %v1217_v47 = vsel %vm2913_vm11, 1.0, %v3522_v4  ;;  %v1126_v63 = vand.u32 2147483647, %v2282_v57  ;;  %v2285_v57 = vld [vmem:[%s3520_s0 + $0xb0] sm:$0xff] }
 0x43c   :  { %v2094_v6 = vpop.eup %2093  ;;  %v1399_v9 = vmul.f32 1.442695, %v1349_v39  ;;  %v1212_v39 = vsel %vm2903_vm10, 1.0, %v3522_v4  ;;  %vm2961_vm1 = vcmp.ne.f32.partialorder %v1120_v0, 1.0  ;;  %vm2970_vm2 = vcmp.ne.f32.partialorder %v1125_v23, 1.0  ;;  %v2283_v0 = vld [vmem:[%s3520_s0 + $0x80] sm:$0xff] }
 0x43d   :  { %v2096_v24 = vpop.eup %2095  ;;  %v1401_v33 = vmul.f32 1.442695, %v1350_v55  ;;  %v1300_v36 = vpop.xlane.xlu0 %1299  ;;  %v2933_v40 = vmul.f32 %v2094_v6, %v1211_v49  ;;  %vm2991_vm3 = vmand %vm1106_vm0, %vm2961_vm1  ;;  %v2284_v49 = vld [vmem:[%s3520_s0 + $0x88] sm:$0xff]  ;;  %vm3008_vm5 = vcmp.ne.f32.partialorder %v1126_v63, 1.0 }
 0x43e   :  { %2105 = vpow2.f32 %v1399_v9  ;;  %v1347_v25 = vsub.f32 %v2590_v35, %v1300_v36  ;;  %v1302_v28 = vpop.xlane.xlu1 %1301  ;;  %1481 = vadd.xlane.f32.xlu1 %v2924_v15  ;;  %v2968_v12 = vmul.f32 %v2096_v24, %v1212_v39  ;;  %v3605_v35 = vmov 0.0   ;;  %vm3004_vm4 = vmand %vm1106_vm0, %vm2970_vm2 }
 0x43f   :  { %2107 = vpow2.f32 %v1401_v33  ;;  %v1348_v52 = vsub.f32 %v2597_v38, %v1302_v28  ;;  %1475 = vadd.xlane.f32.xlu0 %v2933_v40  ;;  %v1123_v33 = vand.u32 2147483647, %v2283_v0  ;;  %v1215_v39 = vsel %vm2957_vm15, 1.0, %v3605_v35  ;;  %vm3035_vm7 = vmand %vm1106_vm0, %vm3008_vm5 }
 0x440   :  { %v2098_v6 = vpop.eup %2097  ;;  %v1395_v9 = vmul.f32 1.442695, %v1347_v25  ;;  %v1218_v25 = vsel %vm2947_vm14, 1.0, %v3605_v35 }
 0x441   :  { %v2100_v36 = vpop.eup %2099  ;;  %v1397_v28 = vmul.f32 1.442695, %v1348_v52  ;;  %v1312_v4 = vpop.xlane.xlu0 %1311  ;;  %v2977_v38 = vmul.f32 %v2098_v6, %v1217_v47  ;;  %v1129_v6 = vand.u32 2147483647, %v2285_v57  ;;  %vm3017_vm6 = vcmp.ne.f32.partialorder %v1123_v33, 1.0  ;;  %v2286_v47 = vld [vmem:[%s3520_s0 + $0xb8] sm:$0xff] }
 0x442   :  { %2109 = vpow2.f32 %v1395_v9  ;;  %v1353_v23 = vsub.f32 %v2608_v42, %v1312_v4  ;;  %v1314_v24 = vpop.xlane.xlu1 %1313  ;;  %1477 = vadd.xlane.f32.xlu1 %v2968_v12  ;;  %v1124_v4 = vand.u32 2147483647, %v2284_v49  ;;  %v1216_v42 = vsel %vm2991_vm3, 1.0, %v3605_v35  ;;  %vm3049_vm9 = vmand %vm1106_vm0, %vm3017_vm6 }
 0x443   :  { %2111 = vpow2.f32 %v1397_v28  ;;  %v1354_v52 = vsub.f32 %v2615_v45, %v1314_v24  ;;  %1487 = vadd.xlane.f32.xlu0 %v2977_v38  ;;  %v3015_v28 = vmul.f32 %v2100_v36, %v1218_v25  ;;  %v1221_v33 = vsel %vm3004_vm4, 1.0, %v3605_v35  ;;  %v2288_v25 = vld [vmem:[%s3520_s0 + $0xa8] sm:$0xff] }
 0x444   :  { %v2102_v9 = vpop.eup %2101  ;;  %v1407_v0 = vmul.f32 1.442695, %v1353_v23  ;;  %vm3039_vm8 = vcmp.ne.f32.partialorder %v1124_v4, 1.0  ;;  %vm3053_vm10 = vcmp.ne.f32.partialorder %v1129_v6, 1.0  ;;  %v1130_v4 = vand.u32 2147483647, %v2286_v47 }
 0x445   :  { %v2104_v24 = vpop.eup %2103  ;;  %v1409_v49 = vmul.f32 1.442695, %v1354_v52  ;;  %v1308_v45 = vpop.xlane.xlu0 %1307  ;;  %v3021_v63 = vmul.f32 %v2102_v9, %v1215_v39  ;;  %v1127_v9 = vand.u32 2147483647, %v2287_v56  ;;  %vm3074_vm11 = vmand %vm1106_vm0, %vm3039_vm8  ;;  %v2289_v39 = vld [vmem:[%s3520_s0 + $0xd0] sm:$0xff] }
 0x446   :  { %2113 = vpow2.f32 %v1407_v0  ;;  %v1351_v57 = vsub.f32 %v2610_v43, %v1308_v45  ;;  %v1310_v37 = vpop.xlane.xlu1 %1309  ;;  %1489 = vadd.xlane.f32.xlu1 %v3015_v28  ;;  %v3060_v55 = vmul.f32 %v2104_v24, %v1216_v42  ;;  %vm3087_vm12 = vmand %vm1106_vm0, %vm3053_vm10  ;;  %vm3096_vm13 = vcmp.ne.f32.partialorder %v1130_v4, 1.0 }
 0x447   :  { %2115 = vpow2.f32 %v1409_v49  ;;  %v1352_v45 = vsub.f32 %v2617_v46, %v1310_v37  ;;  %1483 = vadd.xlane.f32.xlu0 %v3021_v63  ;;  %v1222_v46 = vsel %vm3035_vm7, 1.0, %v3605_v35  ;;  %vm3105_vm14 = vcmp.ne.f32.partialorder %v1127_v9, 1.0  ;;  %vm3123_vm15 = vmand %vm1106_vm0, %vm3096_vm13 }
 0x448   :  { %v2106_v37 = vpop.eup %2105  ;;  %v1403_v52 = vmul.f32 1.442695, %v1351_v57  ;;  %vm3140_vm2 = vmand %vm1106_vm0, %vm3105_vm14 }
 0x449   :  { %v2108_v0 = vpop.eup %2107  ;;  %v1405_v16 = vmul.f32 1.442695, %v1352_v45  ;;  %v1320_v6 = vpop.xlane.xlu0 %1319  ;;  %v3065_v49 = vmul.f32 %v2106_v37, %v1221_v33  ;;  %v1219_v33 = vsel %vm3049_vm9, 1.0, %v3605_v35  ;;  %v1128_v45 = vand.u32 2147483647, %v2288_v25 }
 0x44a   :  { %2117 = vpow2.f32 %v1403_v52  ;;  %v1357_v24 = vsub.f32 %v2628_v50, %v1320_v6  ;;  %v1322_v57 = vpop.xlane.xlu1 %1321  ;;  %1485 = vadd.xlane.f32.xlu1 %v3060_v55  ;;  %v1133_v37 = vand.u32 2147483647, %v2289_v39  ;;  %v3103_v6 = vmul.f32 %v2108_v0, %v1222_v46 }
 0x44b   :  { %2119 = vpow2.f32 %v1405_v16  ;;  %v1358_v47 = vsub.f32 %v2635_v53, %v1322_v57  ;;  %1495 = vadd.xlane.f32.xlu0 %v3065_v49  ;;  %v1220_v50 = vsel %vm3074_vm11, 1.0, %v3605_v35  ;;  %v1225_v39 = vsel %vm3087_vm12, 1.0, %v3605_v35 }
 0x44c   :  { %v2110_v52 = vpop.eup %2109  ;;  %v1415_v56 = vmul.f32 1.442695, %v1357_v24  ;;  %vm3127_vm1 = vcmp.ne.f32.partialorder %v1128_v45, 1.0  ;;  %v2290_v24 = vld [vmem:[%s3520_s0 + $0xd8] sm:$0xff]  ;;  %vm3144_vm3 = vcmp.ne.f32.partialorder %v1133_v37, 1.0  ;;  %v1226_v37 = vsel %vm3123_vm15, 1.0, %v3605_v35 }
 0x44d   :  { %v2112_v16 = vpop.eup %2111  ;;  %v1417_v57 = vmul.f32 1.442695, %v1358_v47  ;;  %v1316_v53 = vpop.xlane.xlu0 %1315  ;;  %v3109_v4 = vmul.f32 %v2110_v52, %v1219_v33  ;;  %v2291_v47 = vld [vmem:[%s3520_s0 + $0xc0] sm:$0xff]  ;;  %vm3162_vm4 = vmand %vm1106_vm0, %vm3127_vm1 }
 0x44e   :  { %2121 = vpow2.f32 %v1415_v56  ;;  %v1355_v46 = vsub.f32 %v2630_v51, %v1316_v53  ;;  %v1318_v9 = vpop.xlane.xlu1 %1317  ;;  %1497 = vadd.xlane.f32.xlu1 %v3103_v6  ;;  %v1134_v53 = vand.u32 2147483647, %v2290_v24  ;;  %v1131_v23 = vand.u32 2147483647, %v2291_v47  ;;  %vm3175_vm5 = vmand %vm1106_vm0, %vm3144_vm3 }
 0x44f   :  { %2123 = vpow2.f32 %v1417_v57  ;;  %v1356_v33 = vsub.f32 %v2637_v54, %v1318_v9  ;;  %1491 = vadd.xlane.f32.xlu0 %v3109_v4  ;;  %v3151_v57 = vmul.f32 %v2112_v16, %v1220_v50  ;;  %v1223_v16 = vsel %vm3140_vm2, 1.0, %v3605_v35 }
 0x450   :  { %v2114_v52 = vpop.eup %2113  ;;  %v1411_v56 = vmul.f32 1.442695, %v1355_v46  ;;  %vm3179_vm6 = vcmp.ne.f32.partialorder %v1134_v53, 1.0  ;;  %vm3184_vm7 = vcmp.ne.f32.partialorder %v1131_v23, 1.0  ;;  %v2293_v53 = vld [vmem:[%s3520_s0 + $0xe0] sm:$0xff] }
 0x451   :  { %v2116_v25 = vpop.eup %2115  ;;  %v1413_v9 = vmul.f32 1.442695, %v1356_v33  ;;  %v1324_v24 = vpop.xlane.xlu0 %1323  ;;  %v3153_v54 = vmul.f32 %v2114_v52, %v1225_v39  ;;  %v2292_v33 = vld [vmem:[%s3520_s0 + $0xc8] sm:$0xff]  ;;  %v1135_v45 = vand.u32 2147483647, %v2293_v53  ;;  %vm3209_vm8 = vmand %vm1106_vm0, %vm3179_vm6  ;;  %v2295_v53 = vld [vmem:[%s3520_s0 + $0xf0] sm:$0xff] }
 0x452   :  { %2125 = vpow2.f32 %v1411_v56  ;;  %v1359_v50 = vsub.f32 %v2650_v59, %v1324_v24  ;;  %1493 = vadd.xlane.f32.xlu1 %v3151_v57  ;;  %v1132_v36 = vand.u32 2147483647, %v2292_v33  ;;  %v1229_v33 = vsel %vm3175_vm5, 1.0, %v3605_v35  ;;  %vm3219_vm9 = vmand %vm1106_vm0, %vm3184_vm7 }
 0x453   :  { %3638 = vst [vmem:[#allocation15_spill] sm:$0xff] %v3153_v54  ;;  %2127 = vpow2.f32 %v1413_v9  ;;  %1503 = vadd.xlane.f32.xlu0 %v3153_v54  ;;  %v1326_v0 = vpop.xlane.xlu1 %1325  ;;  %v3195_v9 = vmul.f32 %v2116_v25, %v1226_v37  ;;  %v1224_v54 = vsel %vm3162_vm4, 1.0, %v3605_v35  ;;  %vm3231_vm11 = vcmp.ne.f32.partialorder %v1135_v45, 1.0 }
 0x454   :  { %v2118_v47 = vpop.eup %2117  ;;  %v1419_v52 = vmul.f32 1.442695, %v1359_v50  ;;  %v1360_v56 = vsub.f32 %v2657_v62, %v1326_v0  ;;  %vm3227_vm10 = vcmp.ne.f32.partialorder %v1132_v36, 1.0  ;;  %v1230_v45 = vsel %vm3209_vm8, 1.0, %v3605_v35  ;;  %vm1199_vm14 = vmand %vm1106_vm0, %vm3231_vm11 }
 0x455   :  { %v2120_v23 = vpop.eup %2119  ;;  %v1328_v24 = vpop.xlane.xlu0 %1327  ;;  %v3197_v59 = vmul.f32 %v2118_v47, %v1223_v16  ;;  %v2294_v16 = vld [vmem:[%s3520_s0 + $0xe8] sm:$0xff]  ;;  %v1137_v47 = vand.u32 2147483647, %v2295_v53  ;;  %v1227_v62 = vsel %vm3219_vm9, 1.0, %v3605_v35  ;;  %vm1196_vm12 = vmand %vm1106_vm0, %vm3227_vm10 }
 0x456   :  { %2129 = vpow2.f32 %v1419_v52  ;;  %v1421_v25 = vmul.f32 1.442695, %v1360_v56  ;;  %v1361_v37 = vsub.f32 %v2648_v58, %v1328_v24  ;;  %1505 = vadd.xlane.f32.xlu1 %v3195_v9  ;;  %v1136_v39 = vand.u32 2147483647, %v2294_v16 }
 0x457   :  { %1499 = vadd.xlane.f32.xlu0 %v3197_v59  ;;  %v1330_v46 = vpop.xlane.xlu1 %1329  ;;  %v3239_v16 = vmul.f32 %v2120_v23, %v1224_v54  ;;  %v2296_v54 = vld [vmem:[%s3520_s0 + $0xf8] sm:$0xff]  ;;  %vm1169_vm15 = vcmp.ne.f32.partialorder %v1137_v47, 1.0  ;;  %v1228_v51 = vsel %vm1196_vm12, 1.0, %v3605_v35 }
 0x458   :  { %v2122_v52 = vpop.eup %2121  ;;  %2131 = vpow2.f32 %v1421_v25  ;;  %v1423_v56 = vmul.f32 1.442695, %v1361_v37  ;;  %v1362_v24 = vsub.f32 %v2652_v60, %v1330_v46  ;;  %vm1168_vm13 = vcmp.ne.f32.partialorder %v1136_v39, 1.0  ;;  %vm1201_vm3 = vmand %vm1106_vm0, %vm1169_vm15 }
 0x459   :  { %v2124_v36 = vpop.eup %2123  ;;  %v3241_v58 = vmul.f32 %v2122_v52, %v1229_v33  ;;  %v1138_v23 = vand.u32 2147483647, %v2296_v54  ;;  %vm1200_vm1 = vmand %vm1106_vm0, %vm1168_vm13  ;;  %v1231_v39 = vsel %vm1199_vm14, 1.0, %v3605_v35  ;;  %v1233_v52 = vsel %vm1201_vm3, 1.0, %v3605_v35 }
 0x45a   :  { %2133 = vpow2.f32 %v1423_v56  ;;  %v1425_v53 = vmul.f32 1.442695, %v1362_v24  ;;  %1501 = vadd.xlane.f32.xlu1 %v3239_v16  ;;  %v3262_v50 = vmul.f32 %v2124_v36, %v1230_v45 }
 0x45b   :  { %1511 = vadd.xlane.f32.xlu0 %v3241_v58  ;;  %vm1170_vm2 = vcmp.ne.f32.partialorder %v1138_v23, 1.0 }
 0x45c   :  { %v2126_v33 = vpop.eup %2125  ;;  %2135 = vpow2.f32 %v1425_v53  ;;  %vm1202_vm4 = vmand %vm1106_vm0, %vm1170_vm2  ;;  %vm1619_vm0 = vcmp.eq.s32.totalorder %v2505_v1, 9 }
 0x45d   :  { %v2128_v25 = vpop.eup %2127  ;;  %v3264_v37 = vmul.f32 %v2126_v33, %v1227_v62  ;;  %v1232_v62 = vsel %vm1200_vm1, 1.0, %v3605_v35  ;;  %v1234_v36 = vsel %vm1202_vm4, 1.0, %v3605_v35 }
 0x45e   :  { %1513 = vadd.xlane.f32.xlu1 %v3262_v50  ;;  %v3274_v0 = vmul.f32 %v2128_v25, %v1228_v51 }
 0x45f   :  { %1507 = vadd.xlane.f32.xlu0 %v3264_v37 }
 0x460   :  { %v2130_v46 = vpop.eup %2129 }
 0x461   :  { %v3277_v42 = vmul.f32 %v2130_v46, %v1231_v39 }
 0x462   :  { %v2132_v47 = vpop.eup %2131  ;;  %1509 = vadd.xlane.f32.xlu1 %v3274_v0 }
 0x463   :  { %1515 = vadd.xlane.f32.xlu0 %v3277_v42  ;;  %v3284_v56 = vmul.f32 %v2132_v47, %v1232_v62 }
 0x464   :  { %v2134_v24 = vpop.eup %2133 }
 0x465   :  { %v3287_v45 = vmul.f32 %v2134_v24, %v1233_v52 }
 0x466   :  { %v2136_v53 = vpop.eup %2135  ;;  %1517 = vadd.xlane.f32.xlu1 %v3284_v56 }
 0x467   :  { %1519 = vadd.xlane.f32.xlu0 %v3287_v45  ;;  %v3291_v54 = vmul.f32 %v2136_v53, %v1234_v36 }
 0x46a   :  { %1521 = vadd.xlane.f32.xlu1 %v3291_v54 }
 0x4b7   :  { %v1464_v23 = vpop.xlane.xlu0 %1463 }
 0x4b8   :  { %v1525_v33 = vmax.f32 %v1464_v23, 1e-30 }
 0x4ba   :  { %2137 = vrcp.f32 %v1525_v33 }
 0x4bb   :  { %v1460_v25 = vpop.xlane.xlu0 %1459  ;;  %v1466_v51 = vpop.xlane.xlu1 %1465  ;;  %2139 = vtanh.f32 %v2508_v2 }
 0x4bc   :  { %v1523_v39 = vmax.f32 %v1460_v25, 1e-30  ;;  %v1526_v35 = vmax.f32 %v1466_v51, 1e-30 }
 0x4be   :  { %2141 = vrcp.f32 %v1523_v39 }
 0x4bf   :  { %2143 = vrcp.f32 %v1526_v35  ;;  %v1462_v46 = vpop.xlane.xlu1 %1461 }
 0x4c0   :  { %2145 = vtanh.f32 %v2510_v3  ;;  %v1524_v62 = vmax.f32 %v1462_v46, 1e-30  ;;  %v1472_v47 = vpop.xlane.xlu0 %1471 }
 0x4c1   :  { %2147 = vtanh.f32 %v2515_v5  ;;  %v1529_v52 = vmax.f32 %v1472_v47, 1e-30 }
 0x4c2   :  { %2149 = vrcp.f32 %v1524_v62 }
 0x4c3   :  { %2151 = vrcp.f32 %v1529_v52  ;;  %v1474_v24 = vpop.xlane.xlu1 %1473 }
 0x4c4   :  { %v2138_v36 = vpop.eup %2137  ;;  %2153 = vtanh.f32 %v2520_v7  ;;  %v1530_v2 = vmax.f32 %v1474_v24, 1e-30  ;;  %v1468_v53 = vpop.xlane.xlu0 %1467 }
 0x4c5   :  { %2155 = vtanh.f32 %v2528_v10  ;;  %v1589_v23 = vmul.f32 %v2138_v36, %v2718_v31  ;;  %v1527_v3 = vmax.f32 %v1468_v53, 1e-30  ;;  %v2140_v33 = vpop.eup %2139 }
 0x4c6   :  { %2157 = vrcp.f32 %v1530_v2 }
 0x4c7   :  { %v1654_v5 = vsel %vm1619_vm0, %v2140_v33, %v1589_v23  ;;  %2159 = vrcp.f32 %v1527_v3  ;;  %v1470_v25 = vpop.xlane.xlu1 %1469 }
 0x4c8   :  { %v2142_v51 = vpop.eup %2141  ;;  %2161 = vtanh.f32 %v2535_v13  ;;  %1686 = vst [vmem:[%s3521_s2 + $0x10] sm:$0xff] %v1654_v5  ;;  %v1528_v7 = vmax.f32 %v1470_v25, 1e-30  ;;  %v1480_v39 = vpop.xlane.xlu0 %1479 }
 0x4c9   :  { %v2144_v10 = vpop.eup %2143  ;;  %2163 = vtanh.f32 %v2530_v11  ;;  %v1587_v31 = vmul.f32 %v2142_v51, %v2727_v41  ;;  %v1533_v35 = vmax.f32 %v1480_v39, 1e-30 }
 0x4ca   :  { %v2146_v46 = vpop.eup %2145  ;;  %v1590_v62 = vmul.f32 %v2144_v10, %v2753_v8  ;;  %2165 = vrcp.f32 %v1528_v7 }
 0x4cb   :  { %v2148_v47 = vpop.eup %2147  ;;  %v1652_v13 = vsel %vm1619_vm0, %v2146_v46, %v1587_v31  ;;  %2167 = vrcp.f32 %v1533_v35  ;;  %v1482_v52 = vpop.xlane.xlu1 %1481 }
 0x4cc   :  { %v2150_v24 = vpop.eup %2149  ;;  %2169 = vtanh.f32 %v2537_v14  ;;  %1684 = vst [vmem:[%s3521_s2] sm:$0xff] %v1652_v13  ;;  %v1655_v11 = vsel %vm1619_vm0, %v2148_v47, %v1590_v62  ;;  %v1534_v41 = vmax.f32 %v1482_v52, 1e-30  ;;  %v1476_v36 = vpop.xlane.xlu0 %1475 }
 0x4cd   :  { %v2152_v8 = vpop.eup %2151  ;;  %2171 = vtanh.f32 %v2548_v18  ;;  %1687 = vst [vmem:[%s3521_s2 + $0x18] sm:$0xff] %v1655_v11  ;;  %v1588_v2 = vmul.f32 %v2150_v24, %v2762_v20  ;;  %v1531_v53 = vmax.f32 %v1476_v36, 1e-30 }
 0x4ce   :  { %v2154_v14 = vpop.eup %2153  ;;  %v1593_v23 = vmul.f32 %v2152_v8, %v2801_v61  ;;  %2173 = vrcp.f32 %v1534_v41 }
 0x4cf   :  { %v2156_v3 = vpop.eup %2155  ;;  %v1653_v33 = vsel %vm1619_vm0, %v2154_v14, %v1588_v2  ;;  %2175 = vrcp.f32 %v1531_v53  ;;  %v1478_v5 = vpop.xlane.xlu1 %1477 }
 0x4d0   :  { %v2158_v25 = vpop.eup %2157  ;;  %2177 = vtanh.f32 %v2555_v21  ;;  %1685 = vst [vmem:[%s3521_s2 + $0x8] sm:$0xff] %v1653_v33  ;;  %v1658_v18 = vsel %vm1619_vm0, %v2156_v3, %v1593_v23  ;;  %v1532_v20 = vmax.f32 %v1478_v5, 1e-30  ;;  %v1488_v51 = vpop.xlane.xlu0 %1487 }
 0x4d1   :  { %v2160_v61 = vpop.eup %2159  ;;  %2179 = vtanh.f32 %v2550_v19  ;;  %1690 = vst [vmem:[%s3521_s2 + $0x30] sm:$0xff] %v1658_v18  ;;  %v1594_v7 = vmul.f32 %v2158_v25, %v2836_v32  ;;  %v1537_v39 = vmax.f32 %v1488_v51, 1e-30 }
 0x4d2   :  { %v2162_v21 = vpop.eup %2161  ;;  %v1591_v10 = vmul.f32 %v2160_v61, %v2845_v48  ;;  %2181 = vrcp.f32 %v1532_v20 }
 0x4d3   :  { %v2164_v31 = vpop.eup %2163  ;;  %v1659_v35 = vsel %vm1619_vm0, %v2162_v21, %v1594_v7  ;;  %2183 = vrcp.f32 %v1537_v39  ;;  %v1490_v46 = vpop.xlane.xlu1 %1489 }
 0x4d4   :  { %v2166_v62 = vpop.eup %2165  ;;  %2185 = vtanh.f32 %v2557_v22  ;;  %1691 = vst [vmem:[%s3521_s2 + $0x38] sm:$0xff] %v1659_v35  ;;  %v1656_v19 = vsel %vm1619_vm0, %v2164_v31, %v1591_v10  ;;  %v1538_v32 = vmax.f32 %v1490_v46, 1e-30  ;;  %v1484_v47 = vpop.xlane.xlu0 %1483  ;;  %v3655_v31 = vld [vmem:[#allocation3_spill] sm:$0xff]  ;;  %v3656_v46 = vld [vmem:[#allocation2_spill] sm:$0xff] }
 0x4d5   :  { %v2168_v48 = vpop.eup %2167  ;;  %2187 = vtanh.f32 %v2568_v26  ;;  %1688 = vst [vmem:[%s3521_s2 + $0x20] sm:$0xff] %v1656_v19  ;;  %v1592_v13 = vmul.f32 %v2166_v62, %v2880_v17  ;;  %v1535_v52 = vmax.f32 %v1484_v47, 1e-30 }
 0x4d6   :  { %v2170_v22 = vpop.eup %2169  ;;  %v1597_v24 = vmul.f32 %v2168_v48, %v2889_v44  ;;  %2189 = vrcp.f32 %v1538_v32 }
 0x4d7   :  { %v2172_v11 = vpop.eup %2171  ;;  %v1657_v41 = vsel %vm1619_vm0, %v2170_v22, %v1592_v13  ;;  %2191 = vrcp.f32 %v1535_v52  ;;  %v1486_v36 = vpop.xlane.xlu1 %1485 }
 0x4d8   :  { %v2174_v8 = vpop.eup %2173  ;;  %2193 = vtanh.f32 %v2575_v29  ;;  %1689 = vst [vmem:[%s3521_s2 + $0x28] sm:$0xff] %v1657_v41  ;;  %v1662_v26 = vsel %vm1619_vm0, %v2172_v11, %v1597_v24  ;;  %v1536_v17 = vmax.f32 %v1486_v36, 1e-30  ;;  %v1496_v2 = vpop.xlane.xlu0 %1495  ;;  %v3657_v24 = vld [vmem:[#allocation4_spill] sm:$0xff]  ;;  %v3658_v36 = vld [vmem:[#allocation5_spill] sm:$0xff] }
 0x4d9   :  { %v2176_v44 = vpop.eup %2175  ;;  %2195 = vtanh.f32 %v2570_v27  ;;  %1694 = vst [vmem:[%s3521_s2 + $0x50] sm:$0xff] %v1662_v26  ;;  %v1598_v53 = vmul.f32 %v2174_v8, %v2924_v15  ;;  %v1541_v14 = vmax.f32 %v1496_v2, 1e-30 }
 0x4da   :  { %v2178_v29 = vpop.eup %2177  ;;  %v1595_v23 = vmul.f32 %v2176_v44, %v2933_v40  ;;  %2197 = vrcp.f32 %v1536_v17 }
 0x4db   :  { %v2180_v3 = vpop.eup %2179  ;;  %v1663_v33 = vsel %vm1619_vm0, %v2178_v29, %v1598_v53  ;;  %2199 = vrcp.f32 %v1541_v14  ;;  %v1498_v5 = vpop.xlane.xlu1 %1497 }
 0x4dc   :  { %v2182_v25 = vpop.eup %2181  ;;  %2201 = vtanh.f32 %v2577_v30  ;;  %1695 = vst [vmem:[%s3521_s2 + $0x58] sm:$0xff] %v1663_v33  ;;  %v1660_v27 = vsel %vm1619_vm0, %v2180_v3, %v1595_v23  ;;  %v1542_v15 = vmax.f32 %v1498_v5, 1e-30  ;;  %v1492_v18 = vpop.xlane.xlu0 %1491  ;;  %v3659_v23 = vld [vmem:[#allocation6_spill] sm:$0xff] }
 0x4dd   :  { %v2184_v40 = vpop.eup %2183  ;;  %2203 = vtanh.f32 %v2588_v34  ;;  %1692 = vst [vmem:[%s3521_s2 + $0x40] sm:$0xff] %v1660_v27  ;;  %v1596_v20 = vmul.f32 %v2182_v25, %v2968_v12  ;;  %v1539_v51 = vmax.f32 %v1492_v18, 1e-30 }
 0x4de   :  { %v2186_v30 = vpop.eup %2185  ;;  %v1601_v61 = vmul.f32 %v2184_v40, %v2977_v38  ;;  %2205 = vrcp.f32 %v1542_v15 }
 0x4df   :  { %v2188_v7 = vpop.eup %2187  ;;  %v1661_v39 = vsel %vm1619_vm0, %v2186_v30, %v1596_v20  ;;  %2207 = vrcp.f32 %v1539_v51  ;;  %v1494_v21 = vpop.xlane.xlu1 %1493  ;;  %v3660_v30 = vld [vmem:[#allocation7_spill] sm:$0xff] }
 0x4e0   :  { %v2190_v10 = vpop.eup %2189  ;;  %2209 = vtanh.f32 %v3655_v31  ;;  %1693 = vst [vmem:[%s3521_s2 + $0x48] sm:$0xff] %v1661_v39  ;;  %v1666_v34 = vsel %vm1619_vm0, %v2188_v7, %v1601_v61  ;;  %v1540_v12 = vmax.f32 %v1494_v21, 1e-30  ;;  %v1504_v35 = vpop.xlane.xlu0 %1503  ;;  %v3661_v7 = vld [vmem:[#allocation8_spill] sm:$0xff]  ;;  %v3662_v31 = vld [vmem:[#allocation15_spill] sm:$0xff] }
 0x4e1   :  { %v2192_v38 = vpop.eup %2191  ;;  %2211 = vtanh.f32 %v3656_v46  ;;  %1698 = vst [vmem:[%s3521_s2 + $0x70] sm:$0xff] %v1666_v34  ;;  %v1602_v62 = vmul.f32 %v2190_v10, %v3015_v28  ;;  %v1545_v19 = vmax.f32 %v1504_v35, 1e-30 }
 0x4e2   :  { %v2194_v32 = vpop.eup %2193  ;;  %v1599_v47 = vmul.f32 %v2192_v38, %v3021_v63  ;;  %2213 = vrcp.f32 %v1540_v12 }
 0x4e3   :  { %v2196_v48 = vpop.eup %2195  ;;  %v1667_v13 = vsel %vm1619_vm0, %v2194_v32, %v1602_v62  ;;  %2215 = vrcp.f32 %v1545_v19  ;;  %v1506_v52 = vpop.xlane.xlu1 %1505  ;;  %v3663_v62 = vld [vmem:[#allocation10_spill] sm:$0xff] }
 0x4e4   :  { %v2198_v22 = vpop.eup %2197  ;;  %2217 = vtanh.f32 %v3657_v24  ;;  %1699 = vst [vmem:[%s3521_s2 + $0x78] sm:$0xff] %v1667_v13  ;;  %v1664_v28 = vsel %vm1619_vm0, %v2196_v48, %v1599_v47  ;;  %v1546_v11 = vmax.f32 %v1506_v52, 1e-30  ;;  %v1500_v41 = vpop.xlane.xlu0 %1499  ;;  %v3664_v48 = vld [vmem:[#allocation9_spill] sm:$0xff] }
 0x4e5   :  { %v2200_v63 = vpop.eup %2199  ;;  %2219 = vtanh.f32 %v3658_v36  ;;  %1696 = vst [vmem:[%s3521_s2 + $0x60] sm:$0xff] %v1664_v28  ;;  %v1600_v8 = vmul.f32 %v2198_v22, %v3060_v55  ;;  %v1543_v26 = vmax.f32 %v1500_v41, 1e-30  ;;  %v3665_v36 = vld [vmem:[#allocation11_spill] sm:$0xff] }
 0x4e6   :  { %v2202_v17 = vpop.eup %2201  ;;  %v1605_v2 = vmul.f32 %v2200_v63, %v3065_v49  ;;  %2221 = vrcp.f32 %v1546_v11 }
 0x4e7   :  { %v2204_v44 = vpop.eup %2203  ;;  %v1665_v53 = vsel %vm1619_vm0, %v2202_v17, %v1600_v8  ;;  %2223 = vrcp.f32 %v1543_v26  ;;  %v1502_v14 = vpop.xlane.xlu1 %1501  ;;  %v3666_v17 = vld [vmem:[#allocation13_spill] sm:$0xff] }
 0x4e8   :  { %v2206_v29 = vpop.eup %2205  ;;  %2225 = vtanh.f32 %v3659_v23  ;;  %1697 = vst [vmem:[%s3521_s2 + $0x68] sm:$0xff] %v1665_v53  ;;  %v1670_v55 = vsel %vm1619_vm0, %v2204_v44, %v1605_v2  ;;  %v1544_v3 = vmax.f32 %v1502_v14, 1e-30  ;;  %v1512_v33 = vpop.xlane.xlu0 %1511 }
 0x4e9   :  { %v2208_v49 = vpop.eup %2207  ;;  %2227 = vtanh.f32 %v2610_v43  ;;  %1702 = vst [vmem:[%s3521_s2 + $0x90] sm:$0xff] %v1670_v55  ;;  %v1606_v5 = vmul.f32 %v2206_v29, %v3103_v6  ;;  %v1549_v25 = vmax.f32 %v1512_v33, 1e-30  ;;  %v3667_v33 = vld [vmem:[#allocation14_spill] sm:$0xff] }
 0x4ea   :  { %v2210_v27 = vpop.eup %2209  ;;  %v1603_v15 = vmul.f32 %v2208_v49, %v3109_v4  ;;  %2229 = vrcp.f32 %v1544_v3 }
 0x4eb   :  { %v2212_v18 = vpop.eup %2211  ;;  %v1671_v40 = vsel %vm1619_vm0, %v2210_v27, %v1606_v5  ;;  %2231 = vrcp.f32 %v1549_v25  ;;  %v1514_v20 = vpop.xlane.xlu1 %1513 }
 0x4ec   :  { %v2214_v51 = vpop.eup %2213  ;;  %2233 = vtanh.f32 %v3660_v30  ;;  %1703 = vst [vmem:[%s3521_s2 + $0x98] sm:$0xff] %v1671_v40  ;;  %v1668_v43 = vsel %vm1619_vm0, %v2212_v18, %v1603_v15  ;;  %v1550_v6 = vmax.f32 %v1514_v20, 1e-30  ;;  %v1508_v61 = vpop.xlane.xlu0 %1507 }
 0x4ed   :  { %v2216_v4 = vpop.eup %2215  ;;  %2235 = vtanh.f32 %v3661_v7  ;;  %1700 = vst [vmem:[%s3521_s2 + $0x80] sm:$0xff] %v1668_v43  ;;  %v1604_v39 = vmul.f32 %v2214_v51, %v3151_v57  ;;  %v1547_v21 = vmax.f32 %v1508_v61, 1e-30 }
 0x4ee   :  { %v2218_v10 = vpop.eup %2217  ;;  %v1609_v34 = vmul.f32 %v2216_v4, %v3662_v31  ;;  %2237 = vrcp.f32 %v1550_v6 }
 0x4ef   :  { %v2220_v12 = vpop.eup %2219  ;;  %v1669_v35 = vsel %vm1619_vm0, %v2218_v10, %v1604_v39  ;;  %2239 = vrcp.f32 %v1547_v21  ;;  %v1510_v38 = vpop.xlane.xlu1 %1509 }
 0x4f0   :  { %v2222_v46 = vpop.eup %2221  ;;  %2241 = vtanh.f32 %v3663_v62  ;;  %1701 = vst [vmem:[%s3521_s2 + $0x88] sm:$0xff] %v1669_v35  ;;  %v1674_v57 = vsel %vm1619_vm0, %v2220_v12, %v1609_v34  ;;  %v1548_v19 = vmax.f32 %v1510_v38, 1e-30  ;;  %v1516_v32 = vpop.xlane.xlu0 %1515 }
 0x4f1   :  { %v2224_v47 = vpop.eup %2223  ;;  %2243 = vtanh.f32 %v3664_v48  ;;  %1706 = vst [vmem:[%s3521_s2 + $0xb0] sm:$0xff] %v1674_v57  ;;  %v1610_v13 = vmul.f32 %v2222_v46, %v3195_v9  ;;  %v1551_v52 = vmax.f32 %v1516_v32, 1e-30 }
 0x4f2   :  { %v2226_v22 = vpop.eup %2225  ;;  %v1607_v24 = vmul.f32 %v2224_v47, %v3197_v59  ;;  %2245 = vrcp.f32 %v1548_v19 }
 0x4f3   :  { %v2228_v28 = vpop.eup %2227  ;;  %v1675_v11 = vsel %vm1619_vm0, %v2226_v22, %v1610_v13  ;;  %2247 = vrcp.f32 %v1551_v52  ;;  %v1518_v41 = vpop.xlane.xlu1 %1517 }
 0x4f4   :  { %v2230_v63 = vpop.eup %2229  ;;  %2249 = vtanh.f32 %v3665_v36  ;;  %1707 = vst [vmem:[%s3521_s2 + $0xb8] sm:$0xff] %v1675_v11  ;;  %v1672_v9 = vsel %vm1619_vm0, %v2228_v28, %v1607_v24  ;;  %v1552_v8 = vmax.f32 %v1518_v41, 1e-30  ;;  %v1520_v26 = vpop.xlane.xlu0 %1519 }
 0x4f5   :  { %v2232_v59 = vpop.eup %2231  ;;  %2251 = vtanh.f32 %v3666_v17  ;;  %1704 = vst [vmem:[%s3521_s2 + $0xa0] sm:$0xff] %v1672_v9  ;;  %v1608_v2 = vmul.f32 %v2230_v63, %v3239_v16  ;;  %v1553_v44 = vmax.f32 %v1520_v26, 1e-30 }
 0x4f6   :  { %v2234_v53 = vpop.eup %2233  ;;  %v1613_v14 = vmul.f32 %v2232_v59, %v3241_v58  ;;  %2253 = vrcp.f32 %v1552_v8  ;;  %v3668_v58 = vld [vmem:[#allocation12_spill] sm:$0xff] }
 0x4f7   :  { %v2236_v29 = vpop.eup %2235  ;;  %v1673_v23 = vsel %vm1619_vm0, %v2234_v53, %v1608_v2  ;;  %2255 = vrcp.f32 %v1553_v44  ;;  %v1522_v55 = vpop.xlane.xlu1 %1521 }
 0x4f8   :  { %v2238_v3 = vpop.eup %2237  ;;  %2257 = vtanh.f32 %v3667_v33  ;;  %1705 = vst [vmem:[%s3521_s2 + $0xa8] sm:$0xff] %v1673_v23  ;;  %v1678_v16 = vsel %vm1619_vm0, %v2236_v29, %v1613_v14  ;;  %v1554_v49 = vmax.f32 %v1522_v55, 1e-30 }
 0x4f9   :  { %v2240_v5 = vpop.eup %2239  ;;  %2259 = vtanh.f32 %v3668_v58  ;;  %1710 = vst [vmem:[%s3521_s2 + $0xd0] sm:$0xff] %v1678_v16  ;;  %v1614_v25 = vmul.f32 %v2238_v3, %v3262_v50 }
 0x4fa   :  { %v2242_v27 = vpop.eup %2241  ;;  %v1611_v15 = vmul.f32 %v2240_v5, %v3264_v37  ;;  %2261 = vrcp.f32 %v1554_v49 }
 0x4fb   :  { %v2244_v18 = vpop.eup %2243  ;;  %v1679_v40 = vsel %vm1619_vm0, %v2242_v27, %v1614_v25  ;;  %2263 = vtanh.f32 %v2652_v60 }
 0x4fc   :  { %v2246_v20 = vpop.eup %2245  ;;  %1711 = vst [vmem:[%s3521_s2 + $0xd8] sm:$0xff] %v1679_v40  ;;  %v1676_v51 = vsel %vm1619_vm0, %v2244_v18, %v1611_v15 }
 0x4fd   :  { %v2248_v30 = vpop.eup %2247  ;;  %1708 = vst [vmem:[%s3521_s2 + $0xc0] sm:$0xff] %v1676_v51  ;;  %v1612_v50 = vmul.f32 %v2246_v20, %v3274_v0 }
 0x4fe   :  { %v2250_v37 = vpop.eup %2249  ;;  %v1615_v43 = vmul.f32 %v2248_v30, %v3277_v42 }
 0x4ff   :  { %v2252_v6 = vpop.eup %2251  ;;  %v1677_v60 = vsel %vm1619_vm0, %v2250_v37, %v1612_v50 }
 0x500   :  { %v2254_v61 = vpop.eup %2253  ;;  %1709 = vst [vmem:[%s3521_s2 + $0xc8] sm:$0xff] %v1677_v60  ;;  %v1680_v4 = vsel %vm1619_vm0, %v2252_v6, %v1615_v43 }
 0x501   :  { %v2256_v7 = vpop.eup %2255  ;;  %1712 = vst [vmem:[%s3521_s2 + $0xe0] sm:$0xff] %v1680_v4  ;;  %v1616_v0 = vmul.f32 %v2254_v61, %v3284_v56 }
 0x502   :  { %v2258_v42 = vpop.eup %2257  ;;  %v1617_v39 = vmul.f32 %v2256_v7, %v3287_v45 }
 0x503   :  { %v2260_v21 = vpop.eup %2259  ;;  %v1681_v10 = vsel %vm1619_vm0, %v2258_v42, %v1616_v0 }
 0x504   :  { %v2262_v31 = vpop.eup %2261  ;;  %1713 = vst [vmem:[%s3521_s2 + $0xe8] sm:$0xff] %v1681_v10  ;;  %v1682_v34 = vsel %vm1619_vm0, %v2260_v21, %v1617_v39 }
 0x505   :  { %1714 = vst [vmem:[%s3521_s2 + $0xf0] sm:$0xff] %v1682_v34  ;;  %v1618_v56 = vmul.f32 %v2262_v31, %v3291_v54  ;;  %v2264_v12 = vpop.eup %2263 }
 0x507   :  { %v1683_v45 = vsel %vm1619_vm0, %v2264_v12, %v1618_v56 }
 0x508   :  { %1715 = vst [vmem:[%s3521_s2 + $0xf8] sm:$0xff] %v1683_v45 }

</bundles_post_ra>
